<compile_context>
chip_gen: v7x
topology: tpu7x:2x2x1
jax: 0.10.0
libtpu: 0.0.40
codegen_flags: <defaults>
</compile_context>

<pallas_src>
import functools

import jax
import jax.numpy as jnp
from jax import lax
from jax.experimental import pallas as pl
from jax.experimental.pallas import tpu as pltpu


# ---------------------------------------------------------------------------
# Tiling helper
# ---------------------------------------------------------------------------
def _pick_hw_tile(hw, n_feat, vreg_budget_bytes=128 * 1024):
    """Largest lane-dense (multiple-of-128) divisor of hw such that the
    (F, tile_hw) f32 channel-mix intermediate stays within ~the vreg file
    (F * tile_hw * 4B <= budget).  No forced >=2-grid-step preference."""
    cap = max(128, ((vreg_budget_bytes // (4 * n_feat)) // 128) * 128)
    best = None
    t = 128
    while t <= min(cap, hw):
        if hw % t == 0:
            best = t
        t += 128
    return best if best is not None else hw   # full extent is always legal


# ---------------------------------------------------------------------------
# Fused kernel: image channel-mix + ReLU + global-avg-pool, then (on the last
# HW tile of each batch row) text proj + image head + classifier.
# ---------------------------------------------------------------------------
def _fused_vqa_kernel(x_ref, xt_ref,
                      wmix_ref, bmix_ref,
                      wtp_ref, btp_ref, wih_ref, bih_ref,
                      w1t_ref, w1i_ref, b1_ref, w2_ref, b2_ref,
                      o_ref, acc_ref, *, n_channels):
    t = pl.program_id(1)

    @pl.when(t == 0)
    def _():
        acc_ref[...] = jnp.zeros_like(acc_ref)

    # ---- image backbone stand-in: 1x1-conv channel mix -> ReLU -> pool -----
    # K == C is tiny (e.g. 4) so stay off the MXU: C broadcast multiply-adds
    # on the VPU, channels on sublanes, H*W lane-dense (NCHW kept, no XLA
    # transpose of the image).
    x = x_ref[...]                                      # (C, tile_hw) f32
    h = wmix_ref[:, 0:1] * x[0:1, :]                    # (F,1)*(1,tile_hw)
    for c in range(1, n_channels):
        h = h + wmix_ref[:, c:c + 1] * x[c:c + 1, :]
    h = jnp.maximum(h + bmix_ref[...], 0.0)             # bias + ReLU, f32
    # Partial global-average-pool sum (1/HW is folded into img_head_w).
    acc_ref[...] += jnp.sum(h, axis=1, keepdims=True)   # (F, 1) scratch

    # ---- head, fused into the last HW tile of this batch row ---------------
    @pl.when(t == pl.num_programs(1) - 1)
    def _():
        bf16 = jnp.bfloat16
        # Text projection (stand-in CLIP get_text_features projection to 512).
        tf = jnp.dot(xt_ref[...].astype(bf16), wtp_ref[...],
                     preferred_element_type=jnp.float32) + btp_ref[...]
        # Replaced image-encoder head: nn.Linear(F_img, 512).  Contract the
        # (F, 1) pooled column on dim 0 -> (1, 512); no explicit transpose.
        imf = lax.dot_general(
            acc_ref[...].astype(bf16), wih_ref[...],
            dimension_numbers=(((0,), (0,)), ((), ())),
            preferred_element_type=jnp.float32) + bih_ref[...]
        # Classifier layer 1 on concat([text, image]) as a split matmul
        # (exactly == torch.cat(dim=1) followed by nn.Linear(1024, 512)).
        hc = (jnp.dot(tf.astype(bf16), w1t_ref[...],
                      preferred_element_type=jnp.float32)
              + jnp.dot(imf.astype(bf16), w1i_ref[...],
                        preferred_element_type=jnp.float32)
              + b1_ref[...])
        hc = jnp.maximum(hc, 0.0)       # ReLU; Dropout(0.5) identity (eval)
        o_ref[...] = jnp.dot(hc.astype(bf16), w2_ref[...],
                             preferred_element_type=jnp.float32) + b2_ref[...]


def pallas_vqa_fused(images, text_pooled, p):
    """images: (B, C, H, W) f32 NCHW; text_pooled: (B, E) f32 -> (B, C_pad)."""
    B, C, H, W = images.shape
    HW = H * W
    F = p["img_mix_wt"].shape[0]
    E = text_pooled.shape[1]
    Cp = p["cls_w2"].shape[1]                   # classes padded to 128 lanes

    x = images.reshape(B, C, HW)                # metadata-only (contiguous)
    xt = text_pooled.reshape(B, 1, E)

    tile_hw = _pick_hw_tile(HW, F)
    n_t = HW // tile_hw

    def const2d(shape):
        return pl.BlockSpec(shape, lambda b, t: (0, 0))

    logits_padded = pl.pallas_call(
        functools.partial(_fused_vqa_kernel, n_channels=C),
        out_shape=jax.ShapeDtypeStruct((B, 1, Cp), jnp.float32),
        grid_spec=pltpu.PrefetchScalarGridSpec(
            num_scalar_prefetch=0,
            grid=(B, n_t),                      # reduction (HW tiles) last
            in_specs=[
                pl.BlockSpec((None, C, tile_hw), lambda b, t: (b, 0, t)),
                pl.BlockSpec((None, 1, E), lambda b, t: (b, 0, 0)),
                const2d(p["img_mix_wt"].shape),
                const2d(p["img_mix_b"].shape),
                const2d(p["text_proj_w"].shape),
                const2d(p["text_proj_b"].shape),
                const2d(p["img_head_w"].shape),
                const2d(p["img_head_b"].shape),
                const2d(p["cls_w1_text"].shape),
                const2d(p["cls_w1_img"].shape),
                const2d(p["cls_b1"].shape),
                const2d(p["cls_w2"].shape),
                const2d(p["cls_b2"].shape),
            ],
            out_specs=pl.BlockSpec((None, 1, Cp), lambda b, t: (b, 0, 0)),
            scratch_shapes=[pltpu.VMEM((F, 1), jnp.float32)],
        ),
        compiler_params=pltpu.CompilerParams(
            dimension_semantics=("parallel", "arbitrary")),  # batch -> cores
    )(x, xt,
      p["img_mix_wt"], p["img_mix_b"],
      p["text_proj_w"], p["text_proj_b"],
      p["img_head_w"], p["img_head_b"],
      p["cls_w1_text"], p["cls_w1_img"], p["cls_b1"],
      p["cls_w2"], p["cls_b2"])
    return logits_padded[:, 0, :]               # (B, C_pad)


# ---------------------------------------------------------------------------
# Params & forward
# ---------------------------------------------------------------------------
def init_params(key, *, vocab=128, embed_dim=64, img_channels=4,
                img_feat=64, img_hw=256, clip_proj_dim=512, hidden=512,
                num_classes=10):
    ks = jax.random.split(key, 8)

    def s(k, shape, fan_in, dtype=jnp.float32):
        return (jax.random.normal(k, shape, jnp.float32)
                / jnp.sqrt(jnp.float32(fan_in))).astype(dtype)

    # Classifier layer-2 weights padded to 128 lanes (lane-dense logit store).
    c_pad = max(128, ((num_classes + 127) // 128) * 128)
    w2 = s(ks[5], (hidden, num_classes), hidden)
    w2_pad = jnp.zeros((hidden, c_pad), jnp.float32).at[:, :num_classes].set(w2)

    # Classifier layer-1 pre-split into text/image halves (hoists the
    # w1[:512] / w1[512:] slices out of the forward pass).
    w1 = s(ks[4], (2 * clip_proj_dim, hidden), 2 * clip_proj_dim)

    # 1/(H*W) of the global-average pool is folded into the image-head weight
    # (mean-pool followed by a linear layer commutes with the scale), so the
    # kernel only accumulates the raw pooled SUM and has no scaling epilogue.
    img_head_w = s(ks[3], (img_feat, clip_proj_dim), img_feat) / float(img_hw)

    return {
        # --- text branch (stand-in for CLIP get_text_features) ---
        "tok_embed": s(ks[0], (vocab, embed_dim), embed_dim),
        "text_proj_w": s(ks[1], (embed_dim, clip_proj_dim), embed_dim, jnp.bfloat16),
        "text_proj_b": jnp.zeros((1, clip_proj_dim), jnp.float32),
        # --- image branch: stand-in backbone (VPU path, f32) + head ---
        "img_mix_wt": s(ks[2], (img_feat, img_channels), img_channels),  # (F, C)
        "img_mix_b": jnp.zeros((img_feat, 1), jnp.float32),
        "img_head_w": img_head_w.astype(jnp.bfloat16),
        "img_head_b": jnp.zeros((1, clip_proj_dim), jnp.float32),
        # --- classifier: Linear(1024,512) -> ReLU -> Dropout -> Linear(512,C)
        "cls_w1_text": w1[:clip_proj_dim].astype(jnp.bfloat16),
        "cls_w1_img": w1[clip_proj_dim:].astype(jnp.bfloat16),
        "cls_b1": jnp.zeros((1, hidden), jnp.float32),
        "cls_w2": w2_pad.astype(jnp.bfloat16),
        "cls_b2": jnp.zeros((1, c_pad), jnp.float32),
    }


def vqa_forward(params, images, input_ids, attention_mask, *, num_classes):
    # ----- text features: token embed + masked mean pool (projection happens
    # inside the fused kernel) -----
    # TODO(synk): real CLIP text transformer not reproduced; the tiny gather +
    # pool stays in XLA (only worth a scalar-prefetch kernel at real seq lens).
    emb = jnp.take(params["tok_embed"], input_ids, axis=0)          # (B, S, E)
    mask = attention_mask.astype(jnp.float32)[..., None]            # (B, S, 1)
    pooled_text = (emb * mask).sum(axis=1) / jnp.maximum(mask.sum(axis=1), 1.0)

    # ----- single fused kernel: image channel-mix + ReLU + avg-pool, then the
    # whole head on the last HW tile of each batch row -----
    logits_padded = pallas_vqa_fused(images, pooled_text, params)
    # Slice padded lanes BEFORE any softmax/argmax the caller may apply.
    return logits_padded[:, :num_classes]


if __name__ == "__main__":
    key = jax.random.PRNGKey(0)
    k_param, k_img, k_ids = jax.random.split(key, 3)

    B, C, H, W = 2, 4, 16, 16
    S = 8
    num_classes = 10

    params = init_params(k_param, img_channels=C, img_hw=H * W,
                         num_classes=num_classes)

    images = jax.random.normal(k_img, (B, C, H, W), jnp.float32)
    input_ids = jax.random.randint(k_ids, (B, S), 0, 128, jnp.int32)
    attention_mask = jnp.concatenate(
        [jnp.ones((B, S - 2), jnp.int32), jnp.zeros((B, 2), jnp.int32)], axis=1)

    fwd = jax.jit(functools.partial(vqa_forward, num_classes=num_classes))
    logits = fwd(params, images, input_ids, attention_mask)
    logits = jax.block_until_ready(logits)
    assert logits.shape == (B, num_classes), logits.shape
    assert bool(jnp.all(jnp.isfinite(logits))), "non-finite logits"
    print("KERNEL_OK")
</pallas_src>

<mosaic_0001>
module attributes {stable_mosaic.version = 11 : i64} {
  func.func @_fused_vqa_kernel(%arg0: i32, %arg1: i32, %arg2: memref<1x4x256xf32, #tpu.memory_space<vmem>>, %arg3: memref<1x1x64xf32, #tpu.memory_space<vmem>>, %arg4: memref<64x4xf32, #tpu.memory_space<vmem>>, %arg5: memref<64x1xf32, #tpu.memory_space<vmem>>, %arg6: memref<64x512xbf16, #tpu.memory_space<vmem>>, %arg7: memref<1x512xf32, #tpu.memory_space<vmem>>, %arg8: memref<64x512xbf16, #tpu.memory_space<vmem>>, %arg9: memref<1x512xf32, #tpu.memory_space<vmem>>, %arg10: memref<512x512xbf16, #tpu.memory_space<vmem>>, %arg11: memref<512x512xbf16, #tpu.memory_space<vmem>>, %arg12: memref<1x512xf32, #tpu.memory_space<vmem>>, %arg13: memref<512x128xbf16, #tpu.memory_space<vmem>>, %arg14: memref<1x128xf32, #tpu.memory_space<vmem>>, %arg15: memref<1x1x128xf32, #tpu.memory_space<vmem>>, %arg16: memref<64x1xf32, #tpu.memory_space<vmem>>) attributes {dimension_semantics = [#tpu.dimension_semantics<parallel>, #tpu.dimension_semantics<arbitrary>], iteration_bounds = array<i64: 2, 1>, scalar_prefetch = 0 : i64, scratch_operands = 1 : i64, tpu.core_type = #tpu.core_type<tc>, window_params = [{transform_indices = @transform_0, window_bounds = array<i64: 1, 4, 256>}, {transform_indices = @transform_1, window_bounds = array<i64: 1, 1, 64>}, {pipeline_mode = #tpu.pipeline_mode<synchronous>, transform_indices = @transform_2, window_bounds = array<i64: 64, 4>}, {pipeline_mode = #tpu.pipeline_mode<synchronous>, transform_indices = @transform_3, window_bounds = array<i64: 64, 1>}, {pipeline_mode = #tpu.pipeline_mode<synchronous>, transform_indices = @transform_4, window_bounds = array<i64: 64, 512>}, {pipeline_mode = #tpu.pipeline_mode<synchronous>, transform_indices = @transform_5, window_bounds = array<i64: 1, 512>}, {pipeline_mode = #tpu.pipeline_mode<synchronous>, transform_indices = @transform_6, window_bounds = array<i64: 64, 512>}, {pipeline_mode = #tpu.pipeline_mode<synchronous>, transform_indices = @transform_7, window_bounds = array<i64: 1, 512>}, {pipeline_mode = #tpu.pipeline_mode<synchronous>, transform_indices = @transform_8, window_bounds = array<i64: 512, 512>}, {pipeline_mode = #tpu.pipeline_mode<synchronous>, transform_indices = @transform_9, window_bounds = array<i64: 512, 512>}, {pipeline_mode = #tpu.pipeline_mode<synchronous>, transform_indices = @transform_10, window_bounds = array<i64: 1, 512>}, {pipeline_mode = #tpu.pipeline_mode<synchronous>, transform_indices = @transform_11, window_bounds = array<i64: 512, 128>}, {pipeline_mode = #tpu.pipeline_mode<synchronous>, transform_indices = @transform_12, window_bounds = array<i64: 1, 128>}, {transform_indices = @transform_13, window_bounds = array<i64: 1, 1, 128>}]} {
    %c0_i32 = arith.constant 0 : i32
    %0 = arith.cmpi eq, %arg1, %c0_i32 : i32
    %1 = arith.extui %0 : i1 to i32
    %c0_i32_0 = arith.constant 0 : i32
    %2 = arith.cmpi ne, %1, %c0_i32_0 : i32
    scf.if %2 {
      %cst_17 = arith.constant 0.000000e+00 : f32
      %41 = vector.broadcast %cst_17 : f32 to vector<64x1xf32>
      %c0_18 = arith.constant 0 : index
      %c0_19 = arith.constant 0 : index
      %42 = vector.load %arg16[%c0_18, %c0_19] : memref<64x1xf32, #tpu.memory_space<vmem>>, vector<64x1xf32>
      tpu.vector_store %arg16[%c0_18, %c0_19], %41 {strides = array<i32>} : memref<64x1xf32, #tpu.memory_space<vmem>>, vector<64x1xf32>,
    } else {
    }
    %c0 = arith.constant 0 : index
    %c0_1 = arith.constant 0 : index
    %c0_2 = arith.constant 0 : index
    %3 = vector.load %arg2[%c0, %c0_1, %c0_2] : memref<1x4x256xf32, #tpu.memory_space<vmem>>, vector<1x4x256xf32>
    %4 = vector.shape_cast %3 : vector<1x4x256xf32> to vector<4x256xf32>
    %c0_3 = arith.constant 0 : index
    %c0_4 = arith.constant 0 : index
    %5 = vector.load %arg4[%c0_3, %c0_4] : memref<64x4xf32, #tpu.memory_space<vmem>>, vector<64x1xf32>
    %6 = vector.extract_strided_slice %4 {offsets = [0, 0], sizes = [1, 256], strides = [1, 1]} : vector<4x256xf32> to vector<1x256xf32>
    %7 = vector.broadcast %5 : vector<64x1xf32> to vector<64x256xf32>
    %8 = vector.broadcast %6 : vector<1x256xf32> to vector<64x256xf32>
    %9 = arith.mulf %7, %8 : vector<64x256xf32>
    %c0_5 = arith.constant 0 : index
    %c1 = arith.constant 1 : index
    %10 = vector.load %arg4[%c0_5, %c1] : memref<64x4xf32, #tpu.memory_space<vmem>>, vector<64x1xf32>
    %11 = vector.extract_strided_slice %4 {offsets = [1, 0], sizes = [1, 256], strides = [1, 1]} : vector<4x256xf32> to vector<1x256xf32>
    %12 = vector.broadcast %10 : vector<64x1xf32> to vector<64x256xf32>
    %13 = vector.broadcast %11 : vector<1x256xf32> to vector<64x256xf32>
    %14 = arith.mulf %12, %13 : vector<64x256xf32>
    %15 = arith.addf %9, %14 : vector<64x256xf32>
    %c0_6 = arith.constant 0 : index
    %c2 = arith.constant 2 : index
    %16 = vector.load %arg4[%c0_6, %c2] : memref<64x4xf32, #tpu.memory_space<vmem>>, vector<64x1xf32>
    %17 = vector.extract_strided_slice %4 {offsets = [2, 0], sizes = [1, 256], strides = [1, 1]} : vector<4x256xf32> to vector<1x256xf32>
    %18 = vector.broadcast %16 : vector<64x1xf32> to vector<64x256xf32>
    %19 = vector.broadcast %17 : vector<1x256xf32> to vector<64x256xf32>
    %20 = arith.mulf %18, %19 : vector<64x256xf32>
    %21 = arith.addf %15, %20 : vector<64x256xf32>
    %c0_7 = arith.constant 0 : index
    %c3 = arith.constant 3 : index
    %22 = vector.load %arg4[%c0_7, %c3] : memref<64x4xf32, #tpu.memory_space<vmem>>, vector<64x1xf32>
    %23 = vector.extract_strided_slice %4 {offsets = [3, 0], sizes = [1, 256], strides = [1, 1]} : vector<4x256xf32> to vector<1x256xf32>
    %24 = vector.broadcast %22 : vector<64x1xf32> to vector<64x256xf32>
    %25 = vector.broadcast %23 : vector<1x256xf32> to vector<64x256xf32>
    %26 = arith.mulf %24, %25 : vector<64x256xf32>
    %27 = arith.addf %21, %26 : vector<64x256xf32>
    %c0_8 = arith.constant 0 : index
    %c0_9 = arith.constant 0 : index
    %28 = vector.load %arg5[%c0_8, %c0_9] : memref<64x1xf32, #tpu.memory_space<vmem>>, vector<64x1xf32>
    %29 = vector.broadcast %28 : vector<64x1xf32> to vector<64x256xf32>
    %30 = arith.addf %27, %29 : vector<64x256xf32>
    %cst = arith.constant 0.000000e+00 : f32
    %31 = vector.broadcast %cst : f32 to vector<64x256xf32>
    %32 = arith.maximumf %30, %31 : vector<64x256xf32>
    %c0_10 = arith.constant 0 : index
    %c0_11 = arith.constant 0 : index
    %33 = vector.load %arg16[%c0_10, %c0_11] : memref<64x1xf32, #tpu.memory_space<vmem>>, vector<64x1xf32>
    %cst_12 = arith.constant dense<0.000000e+00> : vector<64xf32>
    %34 = vector.multi_reduction <add>, %32, %cst_12 [1] : vector<64x256xf32> to vector<64xf32>
    %35 = vector.shape_cast %34 : vector<64xf32> to vector<64x1xf32>
    %36 = arith.addf %33, %35 : vector<64x1xf32>
    %c0_13 = arith.constant 0 : index
    %c0_14 = arith.constant 0 : index
    %37 = vector.load %arg16[%c0_13, %c0_14] : memref<64x1xf32, #tpu.memory_space<vmem>>, vector<64x1xf32>
    tpu.vector_store %arg16[%c0_13, %c0_14], %36 {strides = array<i32>} : memref<64x1xf32, #tpu.memory_space<vmem>>, vector<64x1xf32>,
    %c0_i32_15 = arith.constant 0 : i32
    %38 = arith.cmpi eq, %arg1, %c0_i32_15 : i32
    %39 = arith.extui %38 : i1 to i32
    %c0_i32_16 = arith.constant 0 : i32
    %40 = arith.cmpi ne, %39, %c0_i32_16 : i32
    scf.if %40 {
      %c0_17 = arith.constant 0 : index
      %c0_18 = arith.constant 0 : index
      %c0_19 = arith.constant 0 : index
      %41 = vector.load %arg3[%c0_17, %c0_18, %c0_19] : memref<1x1x64xf32, #tpu.memory_space<vmem>>, vector<1x1x64xf32>
      %42 = vector.shape_cast %41 : vector<1x1x64xf32> to vector<1x64xf32>
      %43 = arith.truncf %42 : vector<1x64xf32> to vector<1x64xbf16>
      %c0_20 = arith.constant 0 : index
      %c0_21 = arith.constant 0 : index
      %44 = vector.load %arg6[%c0_20, %c0_21] : memref<64x512xbf16, #tpu.memory_space<vmem>>, vector<64x512xbf16>
      %cst_22 = arith.constant dense<0.000000e+00> : vector<1x512xf32>
      %45 = tpu.matmul %43, %44, %cst_22 {dimension_numbers = #tpu.dot_dimension_numbers<[1], [0], [0], [1], [0, 0, 1, 1], [], []>} : vector<1x64xbf16>, vector<64x512xbf16>, vector<1x512xf32> -> vector<1x512xf32>
      %c0_23 = arith.constant 0 : index
      %c0_24 = arith.constant 0 : index
      %46 = vector.load %arg7[%c0_23, %c0_24] : memref<1x512xf32, #tpu.memory_space<vmem>>, vector<1x512xf32>
      %47 = arith.addf %45, %46 : vector<1x512xf32>
      %c0_25 = arith.constant 0 : index
      %c0_26 = arith.constant 0 : index
      %48 = vector.load %arg16[%c0_25, %c0_26] : memref<64x1xf32, #tpu.memory_space<vmem>>, vector<64x1xf32>
      %49 = arith.truncf %48 : vector<64x1xf32> to vector<64x1xbf16>
      %c0_27 = arith.constant 0 : index
      %c0_28 = arith.constant 0 : index
      %50 = vector.load %arg8[%c0_27, %c0_28] : memref<64x512xbf16, #tpu.memory_space<vmem>>, vector<64x512xbf16>
      %cst_29 = arith.constant dense<0.000000e+00> : vector<1x512xf32>
      %51 = tpu.matmul %49, %50, %cst_29 {dimension_numbers = #tpu.dot_dimension_numbers<[0], [0], [1], [1], [0, 1, 1, 1], [], []>} : vector<64x1xbf16>, vector<64x512xbf16>, vector<1x512xf32> -> vector<1x512xf32>
      %c0_30 = arith.constant 0 : index
      %c0_31 = arith.constant 0 : index
      %52 = vector.load %arg9[%c0_30, %c0_31] : memref<1x512xf32, #tpu.memory_space<vmem>>, vector<1x512xf32>
      %53 = arith.addf %51, %52 : vector<1x512xf32>
      %54 = arith.truncf %47 : vector<1x512xf32> to vector<1x512xbf16>
      %c0_32 = arith.constant 0 : index
      %c0_33 = arith.constant 0 : index
      %55 = vector.load %arg10[%c0_32, %c0_33] : memref<512x512xbf16, #tpu.memory_space<vmem>>, vector<512x512xbf16>
      %cst_34 = arith.constant dense<0.000000e+00> : vector<1x512xf32>
      %56 = tpu.matmul %54, %55, %cst_34 {dimension_numbers = #tpu.dot_dimension_numbers<[1], [0], [0], [1], [0, 0, 1, 1], [], []>} : vector<1x512xbf16>, vector<512x512xbf16>, vector<1x512xf32> -> vector<1x512xf32>
      %57 = arith.truncf %53 : vector<1x512xf32> to vector<1x512xbf16>
      %c0_35 = arith.constant 0 : index
      %c0_36 = arith.constant 0 : index
      %58 = vector.load %arg11[%c0_35, %c0_36] : memref<512x512xbf16, #tpu.memory_space<vmem>>, vector<512x512xbf16>
      %cst_37 = arith.constant dense<0.000000e+00> : vector<1x512xf32>
      %59 = tpu.matmul %57, %58, %cst_37 {dimension_numbers = #tpu.dot_dimension_numbers<[1], [0], [0], [1], [0, 0, 1, 1], [], []>} : vector<1x512xbf16>, vector<512x512xbf16>, vector<1x512xf32> -> vector<1x512xf32>
      %60 = arith.addf %56, %59 : vector<1x512xf32>
      %c0_38 = arith.constant 0 : index
      %c0_39 = arith.constant 0 : index
      %61 = vector.load %arg12[%c0_38, %c0_39] : memref<1x512xf32, #tpu.memory_space<vmem>>, vector<1x512xf32>
      %62 = arith.addf %60, %61 : vector<1x512xf32>
      %cst_40 = arith.constant 0.000000e+00 : f32
      %63 = vector.broadcast %cst_40 : f32 to vector<1x512xf32>
      %64 = arith.maximumf %62, %63 : vector<1x512xf32>
      %65 = arith.truncf %64 : vector<1x512xf32> to vector<1x512xbf16>
      %c0_41 = arith.constant 0 : index
      %c0_42 = arith.constant 0 : index
      %66 = vector.load %arg13[%c0_41, %c0_42] : memref<512x128xbf16, #tpu.memory_space<vmem>>, vector<512x128xbf16>
      %cst_43 = arith.constant dense<0.000000e+00> : vector<1x128xf32>
      %67 = tpu.matmul %65, %66, %cst_43 {dimension_numbers = #tpu.dot_dimension_numbers<[1], [0], [0], [1], [0, 0, 1, 1], [], []>} : vector<1x512xbf16>, vector<512x128xbf16>, vector<1x128xf32> -> vector<1x128xf32>
      %c0_44 = arith.constant 0 : index
      %c0_45 = arith.constant 0 : index
      %68 = vector.load %arg14[%c0_44, %c0_45] : memref<1x128xf32, #tpu.memory_space<vmem>>, vector<1x128xf32>
      %69 = arith.addf %67, %68 : vector<1x128xf32>
      %c0_46 = arith.constant 0 : index
      %c0_47 = arith.constant 0 : index
      %c0_48 = arith.constant 0 : index
      %70 = vector.load %arg15[%c0_46, %c0_47, %c0_48] : memref<1x1x128xf32, #tpu.memory_space<vmem>>, vector<1x1x128xf32>
      %71 = vector.shape_cast %70 : vector<1x1x128xf32> to vector<1x128xf32>
      %72 = vector.shape_cast %69 : vector<1x128xf32> to vector<1x1x128xf32>
      tpu.vector_store %arg15[%c0_46, %c0_47, %c0_48], %72 {strides = array<i32>} : memref<1x1x128xf32, #tpu.memory_space<vmem>>, vector<1x1x128xf32>,
    } else {
    }
    return
  }
  func.func @transform_0(%arg0: i32, %arg1: i32) -> (i32, i32, i32) {
    %c0_i32 = arith.constant 0 : i32
    %c0_i32_0 = arith.constant 0 : i32
    return %arg0, %c0_i32, %arg1 : i32, i32, i32
  }
  func.func @transform_1(%arg0: i32, %arg1: i32) -> (i32, i32, i32) {
    %c0_i32 = arith.constant 0 : i32
    %c0_i32_0 = arith.constant 0 : i32
    %c0_i32_1 = arith.constant 0 : i32
    return %arg0, %c0_i32, %c0_i32_0 : i32, i32, i32
  }
  func.func @transform_2(%arg0: i32, %arg1: i32) -> (i32, i32) {
    %c0_i32 = arith.constant 0 : i32
    %c0_i32_0 = arith.constant 0 : i32
    %c0_i32_1 = arith.constant 0 : i32
    return %c0_i32, %c0_i32_0 : i32, i32
  }
  func.func @transform_3(%arg0: i32, %arg1: i32) -> (i32, i32) {
    %c0_i32 = arith.constant 0 : i32
    %c0_i32_0 = arith.constant 0 : i32
    %c0_i32_1 = arith.constant 0 : i32
    return %c0_i32, %c0_i32_0 : i32, i32
  }
  func.func @transform_4(%arg0: i32, %arg1: i32) -> (i32, i32) {
    %c0_i32 = arith.constant 0 : i32
    %c0_i32_0 = arith.constant 0 : i32
    %c0_i32_1 = arith.constant 0 : i32
    return %c0_i32, %c0_i32_0 : i32, i32
  }
  func.func @transform_5(%arg0: i32, %arg1: i32) -> (i32, i32) {
    %c0_i32 = arith.constant 0 : i32
    %c0_i32_0 = arith.constant 0 : i32
    %c0_i32_1 = arith.constant 0 : i32
    return %c0_i32, %c0_i32_0 : i32, i32
  }
  func.func @transform_6(%arg0: i32, %arg1: i32) -> (i32, i32) {
    %c0_i32 = arith.constant 0 : i32
    %c0_i32_0 = arith.constant 0 : i32
    %c0_i32_1 = arith.constant 0 : i32
    return %c0_i32, %c0_i32_0 : i32, i32
  }
  func.func @transform_7(%arg0: i32, %arg1: i32) -> (i32, i32) {
    %c0_i32 = arith.constant 0 : i32
    %c0_i32_0 = arith.constant 0 : i32
    %c0_i32_1 = arith.constant 0 : i32
    return %c0_i32, %c0_i32_0 : i32, i32
  }
  func.func @transform_8(%arg0: i32, %arg1: i32) -> (i32, i32) {
    %c0_i32 = arith.constant 0 : i32
    %c0_i32_0 = arith.constant 0 : i32
    %c0_i32_1 = arith.constant 0 : i32
    return %c0_i32, %c0_i32_0 : i32, i32
  }
  func.func @transform_9(%arg0: i32, %arg1: i32) -> (i32, i32) {
    %c0_i32 = arith.constant 0 : i32
    %c0_i32_0 = arith.constant 0 : i32
    %c0_i32_1 = arith.constant 0 : i32
    return %c0_i32, %c0_i32_0 : i32, i32
  }
  func.func @transform_10(%arg0: i32, %arg1: i32) -> (i32, i32) {
    %c0_i32 = arith.constant 0 : i32
    %c0_i32_0 = arith.constant 0 : i32
    %c0_i32_1 = arith.constant 0 : i32
    return %c0_i32, %c0_i32_0 : i32, i32
  }
  func.func @transform_11(%arg0: i32, %arg1: i32) -> (i32, i32) {
    %c0_i32 = arith.constant 0 : i32
    %c0_i32_0 = arith.constant 0 : i32
    %c0_i32_1 = arith.constant 0 : i32
    return %c0_i32, %c0_i32_0 : i32, i32
  }
  func.func @transform_12(%arg0: i32, %arg1: i32) -> (i32, i32) {
    %c0_i32 = arith.constant 0 : i32
    %c0_i32_0 = arith.constant 0 : i32
    %c0_i32_1 = arith.constant 0 : i32
    return %c0_i32, %c0_i32_0 : i32, i32
  }
  func.func @transform_13(%arg0: i32, %arg1: i32) -> (i32, i32, i32) {
    %c0_i32 = arith.constant 0 : i32
    %c0_i32_0 = arith.constant 0 : i32
    %c0_i32_1 = arith.constant 0 : i32
    return %arg0, %c0_i32, %c0_i32_0 : i32, i32, i32
  }
}

</mosaic_0001>

<bundles_post_ra>
// kernel: div.10
= control target key start
LH: loop header
LB: loop body
LE: loop exit
PB: predicated region body
PF: predicated region fallthrough
CT: control target
= control target key end

     0   :  { %s62_s0 = inlined_call_operand.vmem [shape: f32[2,1,64], index: 0, kind: input, shape index: {}]   ;;  %s63_s1 = inlined_call_operand.vmem [shape: f32[2,1,64], index: 1, kind: input, shape index: {}]   ;;  %s64_s2 = inlined_call_operand.vmem [shape: f32[2,1,64], index: 2, kind: output, shape index: {}]  }
   0x1   :  { %v4_v0 = vld [vmem:[%s63_s1] sm:$0x1]  ;;  %v23_v1 = vld [vmem:[%s63_s1 + $0x1] sm:$0x1] }
   0x2   :  { %25 = vrcp.f32 %v4_v0  ;;  %v3_v2 = vld [vmem:[%s62_s0] sm:$0x1]  ;;  %v22_v3 = vld [vmem:[%s62_s0 + $0x1] sm:$0x1] }
   0x3   :  { %27 = vrcp.f32 %v23_v1 }
   0xc   :  { %v26_v4 = vpop.eup %25 }
   0xd   :  { %v28_v5 = vpop.eup %27  ;;  %v8_v6 = vmul.f32 %v26_v4, %v3_v2 }
   0xe   :  { %v18_v7 = vmul.f32 %v28_v5, %v22_v3 }
   0xf   :  { %10 = vst [vmem:[%s64_s2] sm:$0x1] %v8_v6 }
  0x10   :  { %24 = vst [vmem:[%s64_s2 + $0x1] sm:$0x1] %v18_v7 }

// kernel: vqa_forward.1
= control target key start
LH: loop header
LB: loop body
LE: loop exit
PB: predicated region body
PF: predicated region fallthrough
CT: control target
= control target key end

     0   :  { %s5653_s0 = inlined_call_operand.vmem [shape: f32[2,4,256], index: 0, kind: input, shape index: {}]   ;;  %s5654_s1 = inlined_call_operand.vmem [shape: f32[2,1,64], index: 1, kind: input, shape index: {}]   ;;  %s5655_s2 = inlined_call_operand.vmem [shape: f32[64,4], index: 2, kind: input, shape index: {}]   ;;  %s5656_s3 = inlined_call_operand.vmem [shape: f32[64,1], index: 3, kind: input, shape index: {}]   ;;  %s5657_s4 = inlined_call_operand.vmem [shape: bf16[64,512], index: 4, kind: input, shape index: {}]   ;;  %s5658_s5 = inlined_call_operand.vmem [shape: f32[1,512], index: 5, kind: input, shape index: {}]   ;;  %s5659_s6 = inlined_call_operand.vmem [shape: bf16[64,512], index: 6, kind: input, shape index: {}]   ;;  %s5660_s7 = inlined_call_operand.vmem [shape: f32[1,512], index: 7, kind: input, shape index: {}]   ;;  %s5661_s8 = inlined_call_operand.hbm [shape: bf16[512,512], index: 8, kind: input, shape index: {}]   ;;  %s5662_s9 = inlined_call_operand.hbm [shape: bf16[512,512], index: 9, kind: input, shape index: {}]   ;;  %s5663_s10 = inlined_call_operand.vmem [shape: f32[1,512], index: 10, kind: input, shape index: {}]   ;;  %s5664_s11 = inlined_call_operand.vmem [shape: bf16[512,128], index: 11, kind: input, shape index: {}]   ;;  %s5665_s12 = inlined_call_operand.vmem [shape: f32[1,128], index: 12, kind: input, shape index: {}]   ;;  %s5666_s13 = inlined_call_operand.hbm [shape: f32[2,1,128], index: 13, kind: output, shape index: {}]  }
   0x1   :  { %5681 = sst [smem:[#allocation20_spill]] %s5666_s13 }
   0x2   :  { %18 = vsyncpa [#allocation4], 0 }
   0x3   :  { %19 = vsyncpa [#allocation7], 0 }
   0x4   :  { %20 = vsyncpa [#allocation5], 0 }
   0x5   :  { %22 = vsyncpa [#allocation5 + $0x1], 0  ;;  %s4955_s25 = smov 0   ;;  %s4957_s26 = smov 0  }
   0x6   :  { %s4959_s27 = smov 0   ;;  %s4961_s28 = smov 0  }
   0x7   :  { %s4963_s29 = smov 0   ;;  %s4965_s30 = smov 0  }
   0x8 LB: > { %5682 = sst [smem:[#allocation12_spill]] %s4853_s25  ;;  %s3780_s14 = sadd.s32 4294967295, %s4873_s30   ;;  %s4873_s30 = sphi %s4965_s30, %s28_s30   ;;  %s4869_s29 = sphi %s4963_s29, %s5707_s29   ;;  %s4865_s28 = sphi %s4961_s28, %s5706_s28   ;;  %s4861_s27 = sphi %s4959_s27, %s5705_s27   ;;  %s4857_s26 = sphi %s4957_s26, %s5709_s26   ;;  %s4853_s25 = sphi %s4955_s25, %s5708_s25  }
   0x9   : > { %5683 = sst [smem:[#allocation13_spill]] %s4861_s27  ;;  %s3781_s15 = sadd.s32 4294967294, %s4873_s30  }
   0xa   : > { %5684 = sst [smem:[#allocation14_spill]] %s4869_s29  ;;  %s40_s16 = sadd.s32 1, %s4869_s29 }
   0xb   : > { %5685 = sst [smem:[#allocation15_spill]] %s4873_s30  ;;  %s332_s17 = sadd.s32 1, %s4861_s27 }
   0xc   : > { %p42_p0 = scmp.ge.s32.totalorder %s40_s16, 2  ;;  %p342_p1 = scmp.ne.s32.totalorder %s4861_s27, %s4857_s26 }
   0xd   : > { %p343_p2 = scmp.eq.s32.totalorder %s3780_s14, 1  ;;  %p348_p3 = scmp.ne.s32.totalorder %s4857_s26, %s4853_s25 }
   0xe   : > { %s5711_s16 = smov (%p42_p0, %s40_s16), 0  ;;  %p349_p5 = scmp.eq.s32.totalorder %s3781_s15, 1 }
   0xf   : > { %5686 = sst [smem:[#allocation16_spill]] %s5711_s16  ;;  %p4995_p4 = por %p343_p2, %p342_p1 }
  0x10   : > { %s329_s19 = ssub.s32 %s4869_s29, %s5711_s16  ;;  %p3782_p6 = scmp.ge.s32.totalorder %s4873_s30, 1 }
  0x11   : > { %s5687_s18 = scalar_select %p4995_p4, 1, 0 }
  0x12   : > { %p330_p7 = scmp.eq.s32.totalorder %s329_s19, 0  ;;  %p5002_p8 = por %p349_p5, %p348_p3 }
  0x13   : > { %5688 = sst [smem:[#allocation17_spill]] %s5687_s18  ;;  %p356_p9 = scmp.lt.s32.totalorder %s4873_s30, 3 }
  0x14   : > { %s5689_s20 = scalar_select %p5002_p8, 1, 0 }
  0x15   : > { %s5008_s21 = scalar_select %p330_p7, %s4861_s27, %s332_s17  }
  0x16   : > { %5690 = sst [smem:[#allocation18_spill]] %s5689_s20  ;;  %p5010_p10 = pnand %p3782_p6, %p356_p9 }
  0x17   : > { %5691 = sst [smem:[#allocation19_spill]] %s5008_s21  ;;  %p5014_p11 = scmp.eq.s32.totalorder %s3780_s14, 0 }
  0x18   : > { %s5692_s22 = scalar_select %p5010_p10, 1, 0 }
  0x19   : > { %s5693_s23 = scalar_select %p5014_p11, 1, 0 }
  0x1a   : > { %p4173_p12 = pneg %p5010_p10  ;;  %s4875_s24 = smov [#allocation3]  }
  0x1b   : > { %s386_s15 = sshll.u32 %s4875_s24, 4  ;;  %s4876_s17 = smov [#allocation6]   ;;  %s387_s15 = int_to_ptr.vmem [resolvable:$true] %s386_s15 }
  0x1c   : > { %p5022_p13 = pnand %p5014_p11, %p4173_p12  ;;  %s399_s16 = sshll.u32 %s4876_s17, 4  ;;  %s5026_s16 = int_to_ptr.vmem [resolvable:$true] %s399_s16 }
  0x1d   : > { %s4731_s21 = scalar_lea.hbm %s5661_s8, 16384 }
  0x1e   : > { %p4732_p0 = scmp.ne.s32.totalorder %s5661_s8, %s4731_s21  ;;  %p4733_p1 = pneg %p5022_p13 }
  0x1f   : > { %p4738_p5 = scmp.lt.u32.totalorder %s4731_s21, %s5661_s8 }
  0x20   : > { %p4734_p2 = pnand %p4733_p1, %p4732_p0 }
  0x22   : > { %p4735_p3 = pneg %p4734_p2 }
  0x24   : > { %p4740_p6 = pnand %p4738_p5, %p4735_p3 }
  0x26   : > { %4743 = shalt.err (!%p4740_p6)
}
  0x27   : > { %s4744_s17 = scalar_lea.vmem %s387_s15, 16384  ;;  %p4752_p8 = scmp.lt.s32.totalorder %s387_s15, %s387_s15 }
  0x28   : > { %p4745_p7 = scmp.ne.s32.totalorder %s387_s15, %s4744_s17  ;;  %p4753_p4 = scmp.lt.s32.totalorder %s4744_s17, %s4744_s17 }
  0x2a   : > { %p4747_p9 = pnand %p4745_p7, %p4733_p1  ;;  %p4754_p11 = por %p4753_p4, %p4752_p8 }
  0x2c   : > { %p4748_p12 = pneg %p4747_p9 }
  0x2e   : > { %p4755_p10 = pnand %p4754_p11, %p4748_p12 }
  0x30   : > { %4758 = shalt.err (!%p4755_p10)
}
  0x31   : > { %s4877_s27 = smov 256   ;;  %s4878_s29 = smov 16  }
  0x32   : > { %4176 = dma.hbm_to_vmem [thread:$0]  (!%p5022_p13), %s5661_s8, 16384, %s387_s15, [#allocation4], %s4877_s27, %s4877_s27, %s4878_s29  }
  0x33   : > { %s4759_s24 = scalar_lea.hbm %s5662_s9, 16384 }
  0x34   : > { %p4760_p0 = scmp.ne.s32.totalorder %s5662_s9, %s4759_s24  ;;  %p4766_p10 = scmp.lt.u32.totalorder %s4759_s24, %s5662_s9 }
  0x36   : > { %p4762_p4 = pnand %p4760_p0, %p4733_p1 }
  0x38   : > { %p4763_p8 = pneg %p4762_p4 }
  0x3a   : > { %p4768_p11 = pnand %p4766_p10, %p4763_p8 }
  0x3c   : > { %4771 = shalt.err (!%p4768_p11)
}
  0x3d   : > { %s4772_s15 = scalar_lea.vmem %s5026_s16, 16384  ;;  %p4780_p6 = scmp.lt.s32.totalorder %s5026_s16, %s5026_s16 }
  0x3e   : > { %p4773_p2 = scmp.ne.s32.totalorder %s5026_s16, %s4772_s15  ;;  %p4781_p7 = scmp.lt.s32.totalorder %s4772_s15, %s4772_s15 }
  0x40   : > { %p4775_p3 = pnand %p4773_p2, %p4733_p1  ;;  %p4782_p9 = por %p4781_p7, %p4780_p6 }
  0x42   : > { %p4776_p5 = pneg %p4775_p3 }
  0x44   : > { %p4783_p12 = pnand %p4782_p9, %p4776_p5 }
  0x46   : > { %4786 = shalt.err (!%p4783_p12)
}
  0x47   : > { %4179 = dma.hbm_to_vmem [thread:$0]  (!%p5022_p13), %s5662_s9, 16384, %s5026_s16, [#allocation7], %s4877_s27, %s4877_s27, %s4878_s29  }
  0x48   : > { %p5695_p0 = scmp.ne.s32.totalorder %s5692_s22, 0 }
  0x49   : > { %p5696_p4 = scmp.ne.s32.totalorder (!%p5695_p0), %s5693_s23, 0 }
  0x4a   : > { %443 = sbr.rel (%p5695_p0) target bundleno = 1443 (0x5a3), region = 72 }
  0x51   : > { %4840 = dma.done.wait (%p5696_p4), [#allocation4], 16384  }
  0x52   : > { %4842 = vsyncadd (%p5696_p4), [#allocation4], 4294950912 }
  0x53   : > { %4844 = dma.done.wait (%p5696_p4), [#allocation7], 16384  }
  0x54   : > { %4846 = vsyncadd (%p5696_p4), [#allocation7], 4294950912  ;;  %v4879_v0 = vmov 1   ;;  %v4880_v1 = vmov 0   ;;  %v527_v2 = vld [vmem:[%s5655_s2 + $0x10] sm:$0xff]  ;;  %v525_v3 = vld [vmem:[%s5655_s2] sm:$0xff]  ;;  %v574_v21 = vlaneseq }
  0x55   : > { %4248 = vset.pattern.permute.xlu0 %v4879_v0  ;;  %4246 = vset.pattern.permute.xlu1 %v4879_v0  ;;  %v529_v4 = vld [vmem:[%s5655_s2 + $0x20] sm:$0xff]  ;;  %v526_v5 = vld [vmem:[%s5655_s2 + $0x8] sm:$0xff]  ;;  %v532_v6 = vld [vmem:[%s5655_s2 + $0x38] sm:$0xff]  ;;  %v4881_v8 = vmov 2   ;;  %v4882_v10 = vmov 3   ;;  %p498_p13 = scmp.lt.s32.totalorder %s4865_s28, 1 }
  0x56   : > { %1142 = vmatprep.mubr.bf16.mxu0 %v4880_v1  ;;  %1183 = vmatprep.mubr.bf16.mxu1 %v4880_v1  ;;  %v528_v7 = vld [vmem:[%s5655_s2 + $0x18] sm:$0xff]  ;;  %v530_v9 = vld [vmem:[%s5655_s2 + $0x28] sm:$0xff]  ;;  %v531_v11 = vld [vmem:[%s5655_s2 + $0x30] sm:$0xff]  ;;  %vm515_vm0 = vcmask 7168   ;;  %v4883_v20 = vmov 0.0   ;;  %v575_v24 = vshrl.u32 %v574_v21, 7 }
  0x57   : > { %617 = vperm.xlu0 %4248, %v527_v2   ;;  %609 = vperm.xlu1 %4246, %v525_v3   ;;  %v854_v12 = vld [vmem:[%s5656_s3] sm:$0xff]  ;;  %v861_v14 = vld [vmem:[%s5656_s3 + $0x38] sm:$0xff]  ;;  %v855_v15 = vld [vmem:[%s5656_s3 + $0x8] sm:$0xff]  ;;  %516 = vst.msk [vmem:[#allocation2] sm:$0xff] %vm515_vm0, %v4883_v20  ;;  %s5153_s16 = scalar_select %p498_p13, %s4865_s28, 1  ;;  %vm1106_vm1 = vcmask 523264  }
  0x58   : > { %v858_v13 = vld [vmem:[%s5656_s3 + $0x20] sm:$0xff]  ;;  %v856_v16 = vld [vmem:[%s5656_s3 + $0x10] sm:$0xff]  ;;  %v857_v17 = vld [vmem:[%s5656_s3 + $0x18] sm:$0xff]  ;;  %517 = vst.msk [vmem:[#allocation2 + $0x8] sm:$0xff] %vm515_vm0, %v4883_v20  ;;  %v5163_v25 = vsub.s32 0, %v575_v24  ;;  %v580_v26 = vsub.s32 4, %v575_v24 }
  0x59   : > { %v859_v18 = vld [vmem:[%s5656_s3 + $0x28] sm:$0xff]  ;;  %v860_v19 = vld [vmem:[%s5656_s3 + $0x30] sm:$0xff]  ;;  %518 = vst.msk [vmem:[#allocation2 + $0x10] sm:$0xff] %vm515_vm0, %v4883_v20  ;;  %519 = vst.msk [vmem:[#allocation2 + $0x18] sm:$0xff] %vm515_vm0, %v4883_v20  ;;  %s4118_s18 = sshll.u32 %s5153_s16, 3  ;;  %v5165_v29 = vsub.s32 1, %v575_v24  ;;  %s509_s27 = scalar_lea.vmem %s5654_s1, %s5153_s16 }
  0x5a   : > { %520 = vst.msk [vmem:[#allocation2 + $0x20] sm:$0xff] %vm515_vm0, %v4883_v20  ;;  %521 = vst.msk [vmem:[#allocation2 + $0x28] sm:$0xff] %vm515_vm0, %v4883_v20  ;;  %s505_s23 = scalar_lea.vmem %s5653_s0, %s4118_s18  ;;  %v646_v30 = vsub.s32 5, %v575_v24  ;;  %v5167_v32 = vsub.s32 2, %v575_v24  ;;  %v728_v33 = vsub.s32 6, %v575_v24  ;;  %s495_s30 = sand.u32 1, %s4857_s26  }
  0x5b   : > { %625 = vperm.xlu0 %4248, %v529_v4   ;;  %613 = vperm.xlu1 %4246, %v526_v5   ;;  %522 = vst.msk [vmem:[#allocation2 + $0x30] sm:$0xff] %vm515_vm0, %v4883_v20  ;;  %523 = vst.msk [vmem:[#allocation2 + $0x38] sm:$0xff] %vm515_vm0, %v4883_v20  ;;  %v524_v31 = vld [vmem:[%s505_s23] sm:$0xff]  ;;  %s5697_s19 = sld [smem:[#allocation17_spill]]  ;;  %s4115_s23 = sshll.u32 %s4865_s28, 4 }
  0x5c   : > { %v577_v34 = vrot.slane %v524_v31, %v5163_v25  ;;  %v581_v35 = vrot.slane %v524_v31, %v580_v26  ;;  %v643_v37 = vrot.slane %v524_v31, %v5165_v29  ;;  %v647_v38 = vrot.slane %v524_v31, %v646_v30  ;;  %s5698_s21 = sld [smem:[#allocation20_spill]]  ;;  %s3668_s24 = scalar_lea.sflag [#allocation5], %s495_s30 }
  0x5d   : > { %v725_v40 = vrot.slane %v524_v31, %v5167_v32  ;;  %v729_v41 = vrot.slane %v524_v31, %v728_v33  ;;  %s4884_s17 = smov [#allocation8]  }
  0x5e   : > { %v5175_v42 = vrot.slane %v577_v34, %v5163_v25  ;;  %v5178_v43 = vrot.slane %v581_v35, %v5163_v25  ;;  %v5181_v44 = vrot.slane %v643_v37, %v5165_v29  ;;  %v5184_v45 = vrot.slane %v647_v38, %v5165_v29  ;;  %s4791_s15 = sshll.u32 %s4884_s17, 4  ;;  %s4792_s15 = int_to_ptr.vmem [resolvable:$false] %s4791_s15 }
  0x5f   : > { %637 = vperm.xlu0 %4248, %v532_v6   ;;  %4247 = vset.pattern.permute.xlu1 %v4880_v1  ;;  %v5187_v47 = vrot.slane %v725_v40, %v5167_v32  ;;  %v5190_v48 = vrot.slane %v729_v41, %v5167_v32  ;;  %s4793_s16 = scalar_lea.vmem %s4792_s15, 32 }
  0x60   : > { %550 = vperm.xlu1 %4247, %v528_v7  }
  0x61   : > { %p5699_p8 = scmp.ne.s32.totalorder %s5697_s19, 0 }
  0x62   : > { %s5606_s14 = scalar_lea.hbm %s5698_s21, %s4115_s23 }
  0x63   : > { %4257 = vset.pattern.permute.xlu0 %v4881_v8 }
  0x64   : > { %695 = vperm.xlu0 %4257, %v526_v5   ;;  %4249 = vset.pattern.permute.xlu1 %v4879_v0 }
  0x65   : > { %621 = vperm.xlu1 %4249, %v528_v7  }
  0x68   : > { %703 = vperm.xlu0 %4257, %v528_v7  }
  0x69   : > { %4250 = vset.pattern.permute.xlu1 %v4881_v8 }
  0x6a   : > { %691 = vperm.xlu1 %4250, %v525_v3  }
  0x6c   : > { %719 = vperm.xlu0 %4257, %v532_v6  }
  0x6e   : > { %4251 = vset.pattern.permute.xlu1 %v4880_v1 }
  0x6f   : > { %555 = vperm.xlu1 %4251, %v529_v4  }
  0x70   : > { %4261 = vset.pattern.permute.xlu0 %v4882_v10 }
  0x71   : > { %781 = vperm.xlu0 %4261, %v527_v2  }
  0x73   : > { %560 = vperm.xlu1 %4251, %v530_v9  }
  0x75   : > { %801 = vperm.xlu0 %4261, %v532_v6  }
  0x77   : > { %4252 = vset.pattern.permute.xlu1 %v4879_v0 }
  0x78   : > { %629 = vperm.xlu1 %4252, %v530_v9  }
  0x79   : > { %4265 = vset.pattern.permute.xlu0 %v4880_v1 }
  0x7a   : > { %535 = vperm.xlu0 %4265, %v525_v3  }
  0x7c   : > { %4253 = vset.pattern.permute.xlu1 %v4881_v8 }
  0x7d   : > { %699 = vperm.xlu1 %4253, %v527_v2  }
  0x7e   : > { %540 = vperm.xlu0 %4265, %v526_v5  }
  0x81   : > { %4254 = vset.pattern.permute.xlu1 %v4882_v10 }
  0x82   : > { %545 = vperm.xlu0 %4265, %v527_v2   ;;  %773 = vperm.xlu1 %4254, %v525_v3  }
  0x86   : > { %565 = vperm.xlu0 %4265, %v531_v11   ;;  %777 = vperm.xlu1 %4254, %v526_v5  }
  0x8a   : > { %864 = vperm.xlu0 %4265, %v854_v12   ;;  %4255 = vset.pattern.permute.xlu1 %v4880_v1 }
  0x8b   : > { %570 = vperm.xlu1 %4255, %v532_v6  }
  0x8e   : > { %884 = vperm.xlu0 %4265, %v858_v13  }
  0x8f   : > { %4256 = vset.pattern.permute.xlu1 %v4879_v0 }
  0x90   : > { %633 = vperm.xlu1 %4256, %v531_v11  }
  0x92   : > { %899 = vperm.xlu0 %4265, %v861_v14  }
  0x94   : > { %4258 = vset.pattern.permute.xlu1 %v4881_v8 }
  0x95   : > { %707 = vperm.xlu1 %4258, %v529_v4  }
  0x99   : > { %711 = vperm.xlu1 %4258, %v530_v9  }
  0x9d   : > { %4259 = vset.pattern.permute.xlu1 %v4882_v10 }
  0x9e   : > { %785 = vperm.xlu1 %4259, %v528_v7  }
  0xa2   : > { %4260 = vset.pattern.permute.xlu1 %v4881_v8 }
  0xa3   : > { %715 = vperm.xlu1 %4260, %v531_v11  }
  0xa7   : > { %4262 = vset.pattern.permute.xlu1 %v4882_v10 }
  0xa8   : > { %789 = vperm.xlu1 %4262, %v529_v4  }
  0xac   : > { %793 = vperm.xlu1 %4262, %v530_v9  }
  0xb0   : > { %4263 = vset.pattern.permute.xlu1 %v4880_v1 }
  0xb1   : > { %869 = vperm.xlu1 %4263, %v855_v15  }
  0xb5   : > { %4264 = vset.pattern.permute.xlu1 %v4882_v10  ;;  %v5216_v10 = vsub.s32 3, %v575_v24 }
  0xb6   : > { %797 = vperm.xlu1 %4264, %v531_v11   ;;  %v810_v11 = vsub.s32 7, %v575_v24 }
  0xb7   : > { %v807_v13 = vrot.slane %v524_v31, %v5216_v10 }
  0xb8   : > { %v811_v14 = vrot.slane %v524_v31, %v810_v11 }
  0xba   : > { %4266 = vset.pattern.permute.xlu1 %v4880_v1  ;;  %v5227_v20 = vrot.slane %v811_v14, %v5216_v10 }
  0xbb   : > { %874 = vperm.xlu1 %4266, %v856_v16  }
  0xbf   : > { %879 = vperm.xlu1 %4266, %v857_v17  }
  0xc3   : > { %889 = vperm.xlu1 %4266, %v859_v18  }
  0xc7   : > { %894 = vperm.xlu1 %4266, %v860_v19   ;;  %v5224_v19 = vrot.slane %v807_v13, %v5216_v10 }
  0xd6   : > { %v5156_v22 = vpop.permute.xlu1 %609  ;;  %v5158_v23 = vpop.permute.xlu0 %617 }
  0xd7   : > { %v658_v31 = vmul.f32 %v5181_v44, %v5156_v22  ;;  %v662_v35 = vmul.f32 %v5181_v44, %v5158_v23  ;;  %v663_v37 = vmul.f32 %v5184_v45, %v5158_v23 }
  0xda   : > { %v614_v27 = vpop.permute.xlu1 %613  ;;  %v626_v28 = vpop.permute.xlu0 %625 }
  0xdb   : > { %v666_v63 = vmul.f32 %v5181_v44, %v626_v28  ;;  %v667_v0 = vmul.f32 %v5184_v45, %v626_v28  ;;  %v660_v17 = vmul.f32 %v5181_v44, %v614_v27  ;;  %v661_v18 = vmul.f32 %v5184_v45, %v614_v27 }
  0xdc   : > { %v659_v27 = vmul.f32 %v5184_v45, %v5156_v22 }
  0xde   : > { %v5170_v36 = vpop.permute.xlu0 %637 }
  0xdf   : > { %v551_v39 = vpop.permute.xlu1 %550 }
  0xe0   : > { %v598_v50 = vmul.f32 %v5175_v42, %v551_v39  ;;  %v599_v51 = vmul.f32 %v5178_v43, %v551_v39 }
  0xe3   : > { %v696_v46 = vpop.permute.xlu0 %695 }
  0xe4   : > { %v622_v49 = vpop.permute.xlu1 %621  ;;  %v742_v33 = vmul.f32 %v5187_v47, %v696_v46  ;;  %v743_v34 = vmul.f32 %v5190_v48, %v696_v46 }
  0xe5   : > { %v664_v52 = vmul.f32 %v5181_v44, %v622_v49  ;;  %v665_v53 = vmul.f32 %v5184_v45, %v622_v49 }
  0xe7   : > { %v680_v54 = vadd.f32 %v664_v52, %v598_v50  ;;  %v681_v55 = vadd.f32 %v665_v53, %v599_v51  ;;  %v704_v56 = vpop.permute.xlu0 %703 }
  0xe8   : > { %v746_v57 = vmul.f32 %v5187_v47, %v704_v56  ;;  %v747_v58 = vmul.f32 %v5190_v48, %v704_v56 }
  0xe9   : > { %v692_v59 = vpop.permute.xlu1 %691 }
  0xea   : > { %v5198_v60 = vadd.f32 %v746_v57, %v680_v54  ;;  %v5200_v61 = vadd.f32 %v747_v58, %v681_v55  ;;  %v740_v52 = vmul.f32 %v5187_v47, %v692_v59  ;;  %v741_v46 = vmul.f32 %v5190_v48, %v692_v59 }
  0xeb   : > { %v5202_v62 = vpop.permute.xlu0 %719 }
  0xee   : > { %v556_v2 = vpop.permute.xlu1 %555 }
  0xef   : > { %v600_v3 = vmul.f32 %v5175_v42, %v556_v2  ;;  %v601_v4 = vmul.f32 %v5178_v43, %v556_v2 }
  0xf0   : > { %v782_v5 = vpop.permute.xlu0 %781 }
  0xf1   : > { %v5208_v6 = vadd.f32 %v666_v63, %v600_v3  ;;  %v5210_v7 = vadd.f32 %v667_v0, %v601_v4  ;;  %v826_v58 = vmul.f32 %v5224_v19, %v782_v5  ;;  %v827_v63 = vmul.f32 %v5227_v20, %v782_v5 }
  0xf2   : > { %v5212_v8 = vpop.permute.xlu1 %560  ;;  %v672_v5 = vmul.f32 %v5181_v44, %v5170_v36 }
  0xf4   : > { %v5214_v9 = vpop.permute.xlu0 %801 }
  0xf7   : > { %v5218_v12 = vpop.permute.xlu1 %629 }
  0xf9   : > { %v536_v15 = vpop.permute.xlu0 %535 }
  0xfa   : > { %v592_v24 = vmul.f32 %v5175_v42, %v536_v15  ;;  %v593_v26 = vmul.f32 %v5178_v43, %v536_v15 }
  0xfc   : > { %v700_v16 = vpop.permute.xlu1 %699  ;;  %v674_v49 = vadd.f32 %v658_v31, %v592_v24  ;;  %v675_v50 = vadd.f32 %v659_v27, %v593_v26  ;;  %v754_v31 = vmul.f32 %v5187_v47, %v5202_v62  ;;  %v755_v27 = vmul.f32 %v5190_v48, %v5202_v62 }
  0xfd   : > { %v541_v21 = vpop.permute.xlu0 %540  ;;  %v744_v0 = vmul.f32 %v5187_v47, %v700_v16  ;;  %v745_v2 = vmul.f32 %v5190_v48, %v700_v16  ;;  %v673_v16 = vmul.f32 %v5184_v45, %v5170_v36  ;;  %v837_v36 = vmul.f32 %v5227_v20, %v5214_v9 }
  0xfe   : > { %v594_v28 = vmul.f32 %v5175_v42, %v541_v21  ;;  %v595_v30 = vmul.f32 %v5178_v43, %v541_v21  ;;  %v756_v4 = vadd.f32 %v740_v52, %v674_v49  ;;  %v757_v11 = vadd.f32 %v741_v46, %v675_v50 }
 0x100   : > { %v676_v38 = vadd.f32 %v660_v17, %v594_v28  ;;  %v677_v39 = vadd.f32 %v661_v18, %v595_v30 }
 0x101   : > { %v546_v40 = vpop.permute.xlu0 %545  ;;  %v774_v41 = vpop.permute.xlu1 %773 }
 0x102   : > { %v596_v51 = vmul.f32 %v5175_v42, %v546_v40  ;;  %v597_v22 = vmul.f32 %v5178_v43, %v546_v40  ;;  %v5247_v53 = vadd.f32 %v742_v33, %v676_v38  ;;  %v5249_v54 = vadd.f32 %v743_v34, %v677_v39 }
 0x103   : > { %v822_v56 = vmul.f32 %v5224_v19, %v774_v41  ;;  %v823_v57 = vmul.f32 %v5227_v20, %v774_v41  ;;  %v836_v38 = vmul.f32 %v5224_v19, %v5214_v9 }
 0x104   : > { %v678_v55 = vadd.f32 %v662_v35, %v596_v51  ;;  %v679_v23 = vadd.f32 %v663_v37, %v597_v22 }
 0x105   : > { %v5257_v3 = vpop.permute.xlu0 %565  ;;  %v778_v59 = vpop.permute.xlu1 %777  ;;  %v838_v15 = vadd.f32 %v822_v56, %v756_v4  ;;  %v839_v17 = vadd.f32 %v823_v57, %v757_v11 }
 0x106   : > { %v760_v13 = vadd.f32 %v744_v0, %v678_v55  ;;  %v761_v14 = vadd.f32 %v745_v2, %v679_v23 }
 0x108   : > { %v5259_v21 = vadd.f32 %v826_v58, %v760_v13  ;;  %v5261_v24 = vadd.f32 %v827_v63, %v761_v14 }
 0x109   : > { %v865_v18 = vpop.permute.xlu0 %864 }
 0x10a   : > { %v902_v26 = vadd.f32 %v865_v18, %v838_v15  ;;  %v903_v28 = vadd.f32 %v865_v18, %v839_v17  ;;  %v571_v30 = vpop.permute.xlu1 %570 }
 0x10b   : > { %v606_v33 = vmul.f32 %v5175_v42, %v571_v30  ;;  %v607_v34 = vmul.f32 %v5178_v43, %v571_v30 }
 0x10c   : > { %v918_v35 = vmax.f32 %v902_v26, 0.0  ;;  %v919_v37 = vmax.f32 %v903_v28, 0.0  ;;  %v824_v26 = vmul.f32 %v5224_v19, %v778_v59  ;;  %v825_v28 = vmul.f32 %v5227_v20, %v778_v59 }
 0x10d   : > { %v688_v39 = vadd.f32 %v672_v5, %v606_v33  ;;  %v689_v40 = vadd.f32 %v673_v16, %v607_v34  ;;  %v885_v41 = vpop.permute.xlu0 %884  ;;  %v668_v59 = vmul.f32 %v5181_v44, %v5218_v12 }
 0x10e   : > { %v942_v49 = vadd.f32 %v919_v37, %v918_v35  ;;  %v840_v35 = vadd.f32 %v824_v26, %v5247_v53  ;;  %v602_v53 = vmul.f32 %v5175_v42, %v5212_v8 }
 0x10f   : > { %v634_v50 = vpop.permute.xlu1 %633  ;;  %v770_v51 = vadd.f32 %v754_v31, %v688_v39  ;;  %v771_v22 = vadd.f32 %v755_v27, %v689_v40 }
 0x110   : > { %943 = vadd.xlane.f32.xlu1 %v942_v49 }
 0x111   : > { %v900_v62 = vpop.permute.xlu0 %899  ;;  %v852_v52 = vadd.f32 %v836_v38, %v770_v51  ;;  %v853_v46 = vadd.f32 %v837_v36, %v771_v22 }
 0x113   : > { %v916_v55 = vadd.f32 %v900_v62, %v852_v52  ;;  %v917_v23 = vadd.f32 %v900_v62, %v853_v46  ;;  %v684_v52 = vadd.f32 %v668_v59, %v602_v53  ;;  %v4270_v59 = vld [vmem:[%s5657_s4 + $0xc] ss:$16 sps:$4 sm:$0xff]  }
 0x114   : > { %v708_v56 = vpop.permute.xlu1 %707  ;;  %1151 = vmatprep.subr.bf16.mxu1 %v4270_v59  ;;  %v4276_v53 = vld [vmem:[%s5657_s4 + $0x2c] ss:$16 sps:$4 sm:$0xff]  }
 0x115   : > { %v932_v57 = vmax.f32 %v916_v55, 0.0  ;;  %v933_v58 = vmax.f32 %v917_v23, 0.0  ;;  %v748_v4 = vmul.f32 %v5187_v47, %v708_v56  ;;  %v749_v11 = vmul.f32 %v5190_v48, %v708_v56 }
 0x117   : > { %v5277_v63 = vadd.f32 %v933_v58, %v932_v57  ;;  %v764_v14 = vadd.f32 %v748_v4, %v5208_v6  ;;  %v765_v15 = vadd.f32 %v749_v11, %v5210_v7  ;;  %v841_v6 = vadd.f32 %v825_v28, %v5249_v54 }
 0x118   : > { %v712_v0 = vpop.permute.xlu1 %711  ;;  %v603_v54 = vmul.f32 %v5178_v43, %v5212_v8  ;;  %v605_v57 = vmul.f32 %v5178_v43, %v5257_v3  ;;  %v670_v4 = vmul.f32 %v5181_v44, %v634_v50 }
 0x119   : > { %v750_v55 = vmul.f32 %v5187_v47, %v712_v0  ;;  %v751_v23 = vmul.f32 %v5190_v48, %v712_v0 }
 0x11d   : > { %v786_v9 = vpop.permute.xlu1 %785 }
 0x11e   : > { %v828_v22 = vmul.f32 %v5224_v19, %v786_v9  ;;  %v829_v62 = vmul.f32 %v5227_v20, %v786_v9  ;;  %v671_v9 = vmul.f32 %v5184_v45, %v634_v50 }
 0x122   : > { %v716_v2 = vpop.permute.xlu1 %715 }
 0x127   : > { %v790_v13 = vpop.permute.xlu1 %789 }
 0x128   : > { %v830_v17 = vmul.f32 %v5224_v19, %v790_v13  ;;  %v831_v18 = vmul.f32 %v5227_v20, %v790_v13 }
 0x12a   : > { %v846_v5 = vadd.f32 %v830_v17, %v764_v14  ;;  %v847_v16 = vadd.f32 %v831_v18, %v765_v15  ;;  %v844_v15 = vadd.f32 %v828_v22, %v5198_v60  ;;  %v766_v17 = vadd.f32 %v750_v55, %v684_v52  ;;  %v4278_v22 = vld [vmem:[%s5657_s4 + $0x28] ss:$16 sps:$4 sm:$0xff]   ;;  %v4282_v52 = vld [vmem:[%s5657_s4 + $0x4c] ss:$16 sps:$4 sm:$0xff]  }
 0x12b   : > { %v794_v30 = vpop.permute.xlu1 %793  ;;  %v4284_v55 = vld [vmem:[%s5657_s4 + $0x48] ss:$16 sps:$4 sm:$0xff]  }
 0x12c   : > { %v910_v31 = vadd.f32 %v885_v41, %v846_v5  ;;  %v911_v27 = vadd.f32 %v885_v41, %v847_v16  ;;  %v669_v41 = vmul.f32 %v5184_v45, %v5218_v12  ;;  %v604_v12 = vmul.f32 %v5175_v42, %v5257_v3 }
 0x12d   : > { %v832_v11 = vmul.f32 %v5224_v19, %v794_v30  ;;  %v833_v13 = vmul.f32 %v5227_v20, %v794_v30  ;;  %v845_v42 = vadd.f32 %v829_v62, %v5200_v61  ;;  %v752_v3 = vmul.f32 %v5187_v47, %v716_v2  ;;  %v4279_v62 = vld [vmem:[%s5657_s4 + $0x44] ss:$16 sps:$4 sm:$0xff]  }
 0x12e   : > { %v926_v33 = vmax.f32 %v910_v31, 0.0  ;;  %v927_v34 = vmax.f32 %v911_v27, 0.0  ;;  %v685_v46 = vadd.f32 %v669_v41, %v603_v54  ;;  %v686_v50 = vadd.f32 %v670_v4, %v604_v12  ;;  %v4272_v41 = vld [vmem:[%s5657_s4 + $0x8] ss:$16 sps:$4 sm:$0xff]   ;;  %v4275_v54 = vld [vmem:[%s5657_s4 + $0x20] ss:$16 sps:$4 sm:$0xff]  }
 0x12f   : > { %v687_v5 = vadd.f32 %v671_v9, %v605_v57  ;;  %v848_v16 = vadd.f32 %v832_v11, %v766_v17  ;;  %1152 = vmatpush1.bf16.msra.mxu1 %v4272_v41  ;;  %v4287_v12 = vld [vmem:[%s5657_s4 + $0x60] ss:$16 sps:$4 sm:$0xff]   ;;  %v4290_v57 = vld [vmem:[%s5657_s4 + $0x68] ss:$16 sps:$4 sm:$0xff]   ;;  %v4296_v4 = vld [vmem:[%s5659_s6 + $0xc] ss:$16 sps:$4 sm:$0xff]  }
 0x130   : > { %v870_v7 = vpop.permute.xlu1 %869  ;;  %v954_v37 = vadd.f32 %v927_v34, %v926_v33  ;;  %v767_v43 = vadd.f32 %v751_v23, %v685_v46  ;;  %v768_v31 = vadd.f32 %v752_v3, %v686_v50  ;;  %1153 = vmatprep.subr.bf16.mxu1 %v4276_v53  ;;  %v4281_v46 = vld [vmem:[%s5657_s4 + $0x40] ss:$16 sps:$4 sm:$0xff]   ;;  %v4285_v23 = vld [vmem:[%s5657_s4 + $0x64] ss:$16 sps:$4 sm:$0xff]  }
 0x131   : > { %v904_v38 = vadd.f32 %v870_v7, %v840_v35  ;;  %v905_v36 = vadd.f32 %v870_v7, %v841_v6  ;;  %v4291_v11 = vld [vmem:[%s5659_s6] ss:$16 sps:$4 sm:$0xff]   ;;  %v4305_v17 = vld [vmem:[%s5659_s6 + $0x44] ss:$16 sps:$4 sm:$0xff]  }
 0x132   : > { %v849_v26 = vadd.f32 %v833_v13, %v767_v43  ;;  %v4294_v13 = vld [vmem:[%s5659_s6 + $0x8] ss:$16 sps:$4 sm:$0xff]   ;;  %v4308_v43 = vld [vmem:[%s5659_s6 + $0x4c] ss:$16 sps:$4 sm:$0xff]   ;;  %v4303_v3 = vld [vmem:[%s5659_s6 + $0x40] ss:$16 sps:$4 sm:$0xff]  }
 0x133   : > { %v920_v39 = vmax.f32 %v904_v38, 0.0  ;;  %v921_v40 = vmax.f32 %v905_v36, 0.0  ;;  %1154 = vmatpush1.bf16.msra.mxu1 %v4278_v22 }
 0x134   : > { %1155 = vmatprep.subr.bf16.mxu1 %v4282_v52 }
 0x135   : > { %v798_v49 = vpop.permute.xlu1 %797  ;;  %v945_v51 = vadd.f32 %v921_v40, %v920_v39 }
 0x136   : > { %v834_v28 = vmul.f32 %v5224_v19, %v798_v49  ;;  %v835_v60 = vmul.f32 %v5227_v20, %v798_v49 }
 0x137   : > { %946 = vadd.xlane.f32.xlu0 %v945_v51  ;;  %v4267_v51 = vld [vmem:[%s5657_s4 + $0x4] ss:$16 sps:$4 sm:$0xff]   ;;  %1156 = vmatpush1.bf16.msra.mxu1 %v4284_v55 }
 0x138   : > { %v850_v6 = vadd.f32 %v834_v28, %v768_v31  ;;  %1110 = vmatprep.subr.bf16.mxu0 %v4267_v51  ;;  %v4320_v28 = vld [vmem:[#allocation6 + $0x204] ss:$16 sps:$4 sm:$0xff]  }
 0x13a   : > { %v875_v56 = vpop.permute.xlu1 %874 }
 0x13b   : > { %v906_v58 = vadd.f32 %v875_v56, %v5259_v21  ;;  %v907_v8 = vadd.f32 %v875_v56, %v5261_v24  ;;  %v753_v24 = vmul.f32 %v5190_v48, %v716_v2  ;;  %v4288_v56 = vld [vmem:[%s5657_s4 + $0x6c] ss:$16 sps:$4 sm:$0xff]  }
 0x13c   : > { %1157 = vmatprep.subr.bf16.mxu1 %v4288_v56  ;;  %v4318_v56 = vld [vmem:[#allocation6 + $0x200] ss:$16 sps:$4 sm:$0xff]  }
 0x13d   : > { %v922_v0 = vmax.f32 %v906_v58, 0.0  ;;  %v923_v14 = vmax.f32 %v907_v8, 0.0  ;;  %v769_v47 = vadd.f32 %v753_v24, %v687_v5  ;;  %v986_v58 = vld [vmem:[%s509_s27] sm:$0x1]  ;;  %v4293_v8 = vld [vmem:[%s5659_s6 + $0x4] ss:$16 sps:$4 sm:$0xff]   ;;  %1158 = vmatpush1.bf16.msra.mxu1 %v4290_v57 }
 0x13e   : > { %v880_v21 = vpop.permute.xlu1 %879  ;;  %v987_v9 = vpack.c.bf16 %v986_v58, %v986_v58  ;;  %1382 = vmatprep.subr.bf16.mxu1 %v4296_v4  ;;  %v4311_v24 = vld [vmem:[%s5659_s6 + $0x64] ss:$16 sps:$4 sm:$0xff]   ;;  %v4324_v4 = vld [vmem:[#allocation6 + $0x220] ss:$16 sps:$4 sm:$0xff]   ;;  %s496_s27 = scalar_lea.vmem [#allocation8], %s495_s30 }
 0x13f   : > { %v908_v44 = vadd.f32 %v880_v21, %v844_v15  ;;  %v909_v18 = vadd.f32 %v880_v21, %v845_v42  ;;  %v948_v45 = vadd.f32 %v923_v14, %v922_v0  ;;  %v851_v7 = vadd.f32 %v835_v60, %v769_v47  ;;  %v4299_v0 = vld [vmem:[%s5659_s6 + $0x24] ss:$16 sps:$4 sm:$0xff]   ;;  %v4302_v14 = vld [vmem:[%s5659_s6 + $0x2c] ss:$16 sps:$4 sm:$0xff]   ;;  %v4297_v15 = vld [vmem:[%s5659_s6 + $0x20] ss:$16 sps:$4 sm:$0xff]  }
 0x140   : > { %3808 = vmatmul.mubr.msk.bf16.vlgmr.msra.gmra.mrb[0].mxu1 %vm1106_vm1, %v987_v9  ;;  %v4300_v42 = vld [vmem:[%s5659_s6 + $0x28] ss:$16 sps:$4 sm:$0xff]   ;;  %v4326_v57 = vld [vmem:[#allocation6 + $0x224] ss:$16 sps:$4 sm:$0xff]   ;;  %s3680_s29 = sshll.u32 %s496_s27, 4  ;;  %s5608_s29 = int_to_ptr.vmem [resolvable:$true] %s3680_s29 }
 0x141   : > { %v924_v30 = vmax.f32 %v908_v44, 0.0  ;;  %v925_v61 = vmax.f32 %v909_v18, 0.0  ;;  %949 = vadd.xlane.f32.xlu0 %v948_v45  ;;  %1383 = vmatpush1.bf16.msra.mxu1 %v4294_v13  ;;  %v4306_v21 = vld [vmem:[%s5659_s6 + $0x48] ss:$16 sps:$4 sm:$0xff]   ;;  %v4309_v44 = vld [vmem:[%s5659_s6 + $0x60] ss:$16 sps:$4 sm:$0xff]   ;;  %p4794_p2 = scmp.lt.s32.totalorder %s5608_s29, %s4792_s15 }
 0x142   : > { %v890_v27 = vpop.permute.xlu1 %889  ;;  %1384 = vmatprep.subr.bf16.mxu1 %v4302_v14  ;;  %1414 = vmatprep.mubr.bf16.mxu1 %v4880_v1  ;;  %v4312_v18 = vld [vmem:[%s5659_s6 + $0x68] ss:$16 sps:$4 sm:$0xff]   ;;  %v934_v45 = vld [vmem:[#allocation2] sm:$0xff]  ;;  %s4787_s28 = scalar_lea.vmem %s5608_s29, 16 }
 0x143   : > { %v912_v33 = vadd.f32 %v890_v27, %v848_v16  ;;  %v913_v34 = vadd.f32 %v890_v27, %v849_v26  ;;  %v951_v48 = vadd.f32 %v925_v61, %v924_v30  ;;  %v935_v16 = vld [vmem:[#allocation2 + $0x8] sm:$0xff]  ;;  %v4317_v26 = vld [vmem:[#allocation6 + $0x4] ss:$16 sps:$4 sm:$0xff]   ;;  %v4327_v13 = vld [vmem:[#allocation6 + $0x40] ss:$16 sps:$4 sm:$0xff]   ;;  %p4788_p1 = scmp.ne.s32.totalorder %s5608_s29, %s4787_s28  ;;  %p4795_p3 = scmp.lt.s32.totalorder %s4793_s16, %s4787_s28 }
 0x144   : > { %v936_v61 = vld [vmem:[#allocation2 + $0x10] sm:$0xff] }
 0x145   : > { %v928_v2 = vmax.f32 %v912_v33, 0.0  ;;  %v929_v35 = vmax.f32 %v913_v34, 0.0  ;;  %955 = vadd.xlane.f32.xlu0 %v954_v37  ;;  %952 = vadd.xlane.f32.xlu1 %v951_v48  ;;  %v4269_v37 = vld [vmem:[%s5657_s4] ss:$16 sps:$4 sm:$0xff]   ;;  %v4335_v14 = vld [vmem:[#allocation6 + $0x64] ss:$16 sps:$4 sm:$0xff]   ;;  %p4789_p10 = pnand %p4788_p1, %p5699_p8  ;;  %p4796_p5 = por %p4795_p3, %p4794_p2 }
 0x146   : > { %v895_v38 = vpop.permute.xlu1 %894  ;;  %1111 = vmatpush1.bf16.msra.mxu0 %v4269_v37  ;;  %1385 = vmatpush1.bf16.msra.mxu1 %v4300_v42  ;;  %v938_v48 = vld [vmem:[#allocation2 + $0x20] sm:$0xff] }
 0x147   : > { %v914_v36 = vadd.f32 %v895_v38, %v850_v6  ;;  %v915_v19 = vadd.f32 %v895_v38, %v851_v7  ;;  %v957_v39 = vadd.f32 %v929_v35, %v928_v2  ;;  %1386 = vmatprep.subr.bf16.mxu1 %v4308_v43  ;;  %v937_v2 = vld [vmem:[#allocation2 + $0x18] sm:$0xff]  ;;  %v5435_v42 = vld [vmem:[%s5658_s5] sm:$0xf]  ;;  %p4790_p11 = pneg %p4789_p10 }
 0x148   : > { %v4333_v43 = vld [vmem:[#allocation6 + $0x60] ss:$16 sps:$4 sm:$0xff]  }
 0x149   : > { %v930_v20 = vmax.f32 %v914_v36, 0.0  ;;  %v931_v40 = vmax.f32 %v915_v19, 0.0  ;;  %958 = vadd.xlane.f32.xlu1 %v957_v39  ;;  %v939_v36 = vld [vmem:[#allocation2 + $0x28] sm:$0xff]  ;;  %p4797_p6 = pnand %p4796_p5, %p4790_p11 }
 0x14a   : > { %1387 = vmatpush1.bf16.msra.mxu1 %v4306_v21  ;;  %v4341_v21 = vld [vmem:[#allocation6 + $0x84] ss:$16 sps:$4 sm:$0xff]  }
 0x14b   : > { %v960_v49 = vadd.f32 %v931_v40, %v930_v20  ;;  %v940_v20 = vld [vmem:[#allocation2 + $0x30] sm:$0xff]  ;;  %v941_v40 = vld [vmem:[#allocation2 + $0x38] sm:$0xff] }
 0x14d   : > { %961 = vadd.xlane.f32.xlu0 %v960_v49  ;;  %964 = vadd.xlane.f32.xlu1 %v5277_v63  ;;  %v4273_v63 = vld [vmem:[%s5657_s4 + $0x24] ss:$16 sps:$4 sm:$0xff]  }
 0x14e   : > { %1112 = vmatprep.subr.bf16.mxu0 %v4273_v63 }
 0x14f   : > { %1113 = vmatpush1.bf16.msra.mxu0 %v4275_v54 }
 0x150   : > { %1114 = vmatprep.subr.bf16.mxu0 %v4279_v62 }
 0x153   : > { %1115 = vmatpush1.bf16.msra.mxu0 %v4281_v46 }
 0x154   : > { %1116 = vmatprep.subr.bf16.mxu0 %v4285_v23  ;;  %v4315_v23 = vld [vmem:[#allocation6] ss:$16 sps:$4 sm:$0xff]  }
 0x157   : > { %1117 = vmatpush1.bf16.msra.mxu0 %v4287_v12  ;;  %v4323_v12 = vld [vmem:[#allocation6 + $0x24] ss:$16 sps:$4 sm:$0xff]  }
 0x158   : > { %1341 = vmatprep.subr.bf16.mxu0 %v4293_v8  ;;  %v4321_v8 = vld [vmem:[#allocation6 + $0x20] ss:$16 sps:$4 sm:$0xff]  }
 0x15a   : > { %3807 = vmatmul.mubr.msk.bf16.vlgmr.msra.gmra.mrb[0].mxu0 %vm1106_vm1, %v987_v9  ;;  %v4329_v9 = vld [vmem:[#allocation6 + $0x44] ss:$16 sps:$4 sm:$0xff]  }
 0x15b   : > { %1342 = vmatpush1.bf16.msra.mxu0 %v4291_v11  ;;  %1373 = vmatprep.mubr.bf16.mxu0 %v4880_v1  ;;  %v4314_v1 = vld [vmem:[%s5659_s6 + $0x6c] ss:$16 sps:$4 sm:$0xff]   ;;  %v4332_v11 = vld [vmem:[#allocation6 + $0x244] ss:$16 sps:$4 sm:$0xff]  }
 0x15c   : > { %1343 = vmatprep.subr.bf16.mxu0 %v4299_v0  ;;  %1388 = vmatprep.subr.bf16.mxu1 %v4314_v1  ;;  %v4330_v0 = vld [vmem:[#allocation6 + $0x240] ss:$16 sps:$4 sm:$0xff]  }
 0x15d   : > { %1389 = vmatpush1.bf16.msra.mxu1 %v4312_v18 }
 0x15e   : > { %2368 = vmatprep.subr.bf16.mxu1 %v4320_v28  ;;  %v4342_v28 = vld [vmem:[#allocation6 + $0x280] ss:$16 sps:$4 sm:$0xff]  }
 0x15f   : > { %1344 = vmatpush1.bf16.msra.mxu0 %v4297_v15  ;;  %v4338_v15 = vld [vmem:[#allocation6 + $0x264] ss:$16 sps:$4 sm:$0xff]  }
 0x160   : > { %1345 = vmatprep.subr.bf16.mxu0 %v4305_v17  ;;  %v1097_v17 = vrot.slane %v5435_v42, %v5167_v32 }
 0x163   : > { %1346 = vmatpush1.bf16.msra.mxu0 %v4303_v3  ;;  %v4336_v3 = vld [vmem:[#allocation6 + $0x260] ss:$16 sps:$4 sm:$0xff]  }
 0x164   : > { %1347 = vmatprep.subr.bf16.mxu0 %v4311_v24  ;;  %v4344_v24 = vld [vmem:[#allocation6 + $0x284] ss:$16 sps:$4 sm:$0xff]  }
 0x167   : > { %1348 = vmatpush1.bf16.msra.mxu0 %v4309_v44 }
 0x168   : > { %2327 = vmatprep.subr.bf16.mxu0 %v4317_v26  ;;  %v4339_v26 = vld [vmem:[#allocation6 + $0x80] ss:$16 sps:$4 sm:$0xff]  }
 0x19d   : > { %v944_v50 = vpop.xlane.xlu1 %943 }
 0x19e   : > { %v966_v5 = vadd.f32 %v944_v50, %v934_v45 }
 0x1a0   : > { %975 = vst.msk [vmem:[#allocation2] sm:$0xff] %vm515_vm0, %v966_v5 }
 0x1a7   : > { %v1192_v27 = vld [vmem:[#allocation2] sm:$0xff] }
 0x1c4   : > { %v947_v60 = vpop.xlane.xlu0 %946 }
 0x1c5   : > { %v967_v30 = vadd.f32 %v947_v60, %v935_v16 }
 0x1c7   : > { %976 = vst.msk [vmem:[#allocation2 + $0x8] sm:$0xff] %vm515_vm0, %v967_v30 }
 0x1ce   : > { %v950_v31 = vpop.xlane.xlu0 %949  ;;  %v1193_v47 = vld [vmem:[#allocation2 + $0x8] sm:$0xff] }
 0x1cf   : > { %v968_v33 = vadd.f32 %v950_v31, %v936_v61  ;;  %v1200_v34 = vpack.c.bf16 %v1193_v47, %v1192_v27  ;;  %v4347_v61 = vld [vmem:[#allocation6 + $0xa4] ss:$16 sps:$4 sm:$0xff]   ;;  %v4345_v27 = vld [vmem:[#allocation6 + $0xa0] ss:$16 sps:$4 sm:$0xff]  }
 0x1d0   : > { %v4350_v31 = vld [vmem:[#allocation6 + $0x2a4] ss:$16 sps:$4 sm:$0xff]   ;;  %v4348_v47 = vld [vmem:[#allocation6 + $0x2a0] ss:$16 sps:$4 sm:$0xff]  }
 0x1d1   : > { %977 = vst.msk [vmem:[#allocation2 + $0x10] sm:$0xff] %vm515_vm0, %v968_v33  ;;  %1221 = vxpose.xlu0.c.b16.start [1/4] (short) (narrow) %v1200_v34, 16  ;;  %v4353_v33 = vld [vmem:[#allocation6 + $0xc4] ss:$16 sps:$4 sm:$0xff]  }
 0x1d2   : > { %v956_v35 = vpop.xlane.xlu0 %955  ;;  %v953_v6 = vpop.xlane.xlu1 %952  ;;  %v4356_v34 = vld [vmem:[#allocation6 + $0x2c4] ss:$16 sps:$4 sm:$0xff]  }
 0x1d3   : > { %v970_v7 = vadd.f32 %v956_v35, %v938_v48  ;;  %v969_v38 = vadd.f32 %v953_v6, %v937_v2  ;;  %v4351_v48 = vld [vmem:[#allocation6 + $0xc0] ss:$16 sps:$4 sm:$0xff]   ;;  %v4359_v35 = vld [vmem:[#allocation6 + $0xe4] ss:$16 sps:$4 sm:$0xff]  }
 0x1d4   : > { %v4354_v2 = vld [vmem:[#allocation6 + $0x2c0] ss:$16 sps:$4 sm:$0xff]   ;;  %v4362_v6 = vld [vmem:[#allocation6 + $0x2e4] ss:$16 sps:$4 sm:$0xff]  }
 0x1d5   : > { %979 = vst.msk [vmem:[#allocation2 + $0x20] sm:$0xff] %vm515_vm0, %v970_v7  ;;  %978 = vst.msk [vmem:[#allocation2 + $0x18] sm:$0xff] %vm515_vm0, %v969_v38  ;;  %v4357_v7 = vld [vmem:[#allocation6 + $0xe0] ss:$16 sps:$4 sm:$0xff]  }
 0x1d6   : > { %v959_v19 = vpop.xlane.xlu1 %958  ;;  %v4360_v38 = vld [vmem:[#allocation6 + $0x2e0] ss:$16 sps:$4 sm:$0xff]  }
 0x1d7   : > { %v971_v39 = vadd.f32 %v959_v19, %v939_v36  ;;  %v4365_v36 = vld [vmem:[#allocation6 + $0x104] ss:$16 sps:$4 sm:$0xff]  }
 0x1d8   : > { %v1194_v41 = vld [vmem:[#allocation2 + $0x10] sm:$0xff] }
 0x1d9   : > { %980 = vst.msk [vmem:[#allocation2 + $0x28] sm:$0xff] %vm515_vm0, %v971_v39  ;;  %v4368_v19 = vld [vmem:[#allocation6 + $0x304] ss:$16 sps:$4 sm:$0xff]   ;;  %v4363_v39 = vld [vmem:[#allocation6 + $0x100] ss:$16 sps:$4 sm:$0xff]  }
 0x1da   : > { %v962_v49 = vpop.xlane.xlu0 %961  ;;  %v965_v51 = vpop.xlane.xlu1 %964 }
 0x1db   : > { %v972_v37 = vadd.f32 %v962_v49, %v940_v20  ;;  %v973_v59 = vadd.f32 %v965_v51, %v941_v40  ;;  %v4366_v20 = vld [vmem:[#allocation6 + $0x300] ss:$16 sps:$4 sm:$0xff]   ;;  %v4371_v40 = vld [vmem:[#allocation6 + $0x124] ss:$16 sps:$4 sm:$0xff]  }
 0x1dc   : > { %v1195_v63 = vld [vmem:[#allocation2 + $0x18] sm:$0xff]  ;;  %v1196_v54 = vld [vmem:[#allocation2 + $0x20] sm:$0xff] }
 0x1dd   : > { %981 = vst.msk [vmem:[#allocation2 + $0x30] sm:$0xff] %vm515_vm0, %v972_v37  ;;  %982 = vst.msk [vmem:[#allocation2 + $0x38] sm:$0xff] %vm515_vm0, %v973_v59  ;;  %v1201_v53 = vpack.c.bf16 %v1195_v63, %v1194_v41  ;;  %v4374_v49 = vld [vmem:[#allocation6 + $0x324] ss:$16 sps:$4 sm:$0xff]   ;;  %v4369_v51 = vld [vmem:[#allocation6 + $0x120] ss:$16 sps:$4 sm:$0xff]  }
 0x1de   : > { %v4372_v37 = vld [vmem:[#allocation6 + $0x320] ss:$16 sps:$4 sm:$0xff]   ;;  %v4377_v59 = vld [vmem:[#allocation6 + $0x144] ss:$16 sps:$4 sm:$0xff]  }
 0x1df   : > { %1222 = vxpose.xlu0.c.b16.cont [2/4] (short) (narrow) %v1201_v53, 16  ;;  %v4380_v41 = vld [vmem:[#allocation6 + $0x344] ss:$16 sps:$4 sm:$0xff]   ;;  %v4375_v63 = vld [vmem:[#allocation6 + $0x140] ss:$16 sps:$4 sm:$0xff]  }
 0x1e0   : > { %v1197_v22 = vld [vmem:[#allocation2 + $0x28] sm:$0xff]  ;;  %v4378_v53 = vld [vmem:[#allocation6 + $0x340] ss:$16 sps:$4 sm:$0xff]  }
 0x1e1   : > { %v1202_v62 = vpack.c.bf16 %v1197_v22, %v1196_v54  ;;  %v4383_v54 = vld [vmem:[#allocation6 + $0x164] ss:$16 sps:$4 sm:$0xff]  }
 0x1e2   : > { %v4386_v22 = vld [vmem:[#allocation6 + $0x364] ss:$16 sps:$4 sm:$0xff]  }
 0x1e3   : > { %1223 = vxpose.xlu0.c.b16.cont [3/4] (short) (narrow) %v1202_v62, 16  ;;  %v4381_v62 = vld [vmem:[#allocation6 + $0x160] ss:$16 sps:$4 sm:$0xff]  }
 0x1e4   : > { %v1198_v52 = vld [vmem:[#allocation2 + $0x30] sm:$0xff]  ;;  %v1199_v46 = vld [vmem:[#allocation2 + $0x38] sm:$0xff] }
 0x1e5   : > { %v1203_v55 = vpack.c.bf16 %v1199_v46, %v1198_v52  ;;  %v4384_v52 = vld [vmem:[#allocation6 + $0x360] ss:$16 sps:$4 sm:$0xff]   ;;  %v4389_v46 = vld [vmem:[#allocation6 + $0x184] ss:$16 sps:$4 sm:$0xff]  }
 0x1e7   : > { %1224 = vxpose.xlu0.c.b16.end [4/4] (short) (narrow) %v1203_v55, 16  ;;  %v4392_v55 = vld [vmem:[#allocation6 + $0x384] ss:$16 sps:$4 sm:$0xff]  }
 0x213   : > { %v1185_v44 = vpop.f32.mrb[0].mxu1 }
 0x214   : > { %v5443_v45 = vadd.f32 %v1185_v44, %v1097_v17  ;;  %v5445_v50 = vpop.f32.mrb[1].mxu1  ;;  %v4408_v17 = vld [vmem:[#allocation6 + $0x3e0] ss:$16 sps:$4 sm:$0xff]  }
 0x215   : > { %v1189_v16 = vpop.f32.mrb[2].mxu1 }
 0x216   : > { %v1190_v30 = vpop.f32.mrb[3].mxu1 }
 0x22d   : > { %v5439_v1 = vpop.f32.mrb[0].mxu0 }
 0x22e   : > { %v5441_v18 = vpop.f32.mrb[1].mxu0 }
 0x22f   : > { %v1148_v5 = vpop.f32.mrb[2].mxu0 }
 0x230   : > { %v1149_v60 = vpop.f32.mrb[3].mxu0 }
 0x241   : > { %v1229_v58 = vpop.trf.xlu0 }
 0x242   : > { %3825 = vmatmul.mubr.msk.bf16.vlgmr.msra.gmra.mrb[4].mxu0 %vm1106_vm1, %v1229_v58  ;;  %3826 = vmatmul.mubr.msk.bf16.vlgmr.msra.gmra.mrb[4].mxu1 %vm1106_vm1, %v1229_v58  ;;  %v4393_v58 = vld [vmem:[#allocation6 + $0x1a0] ss:$16 sps:$4 sm:$0xff]  }
 0x243   : > { %2328 = vmatpush1.bf16.msra.mxu0 %v4315_v23  ;;  %2369 = vmatpush1.bf16.msra.mxu1 %v4318_v56  ;;  %v4387_v23 = vld [vmem:[#allocation6 + $0x180] ss:$16 sps:$4 sm:$0xff]  }
 0x244   : > { %2329 = vmatprep.subr.bf16.mxu0 %v4323_v12  ;;  %2370 = vmatprep.subr.bf16.mxu1 %v4326_v57  ;;  %v4390_v56 = vld [vmem:[#allocation6 + $0x380] ss:$16 sps:$4 sm:$0xff]   ;;  %v4395_v12 = vld [vmem:[#allocation6 + $0x1a4] ss:$16 sps:$4 sm:$0xff]  }
 0x245   : > { %v4398_v57 = vld [vmem:[#allocation6 + $0x3a4] ss:$16 sps:$4 sm:$0xff]  }
 0x247   : > { %2330 = vmatpush1.bf16.msra.mxu0 %v4321_v8  ;;  %2371 = vmatpush1.bf16.msra.mxu1 %v4324_v4  ;;  %v4396_v8 = vld [vmem:[#allocation6 + $0x3a0] ss:$16 sps:$4 sm:$0xff]   ;;  %v4401_v4 = vld [vmem:[#allocation6 + $0x1c4] ss:$16 sps:$4 sm:$0xff]  }
 0x248   : > { %2331 = vmatprep.subr.bf16.mxu0 %v4329_v9  ;;  %2372 = vmatprep.subr.bf16.mxu1 %v4332_v11  ;;  %v4404_v9 = vld [vmem:[#allocation6 + $0x3c4] ss:$16 sps:$4 sm:$0xff]   ;;  %v4399_v11 = vld [vmem:[#allocation6 + $0x1c0] ss:$16 sps:$4 sm:$0xff]  }
 0x24b   : > { %2332 = vmatpush1.bf16.msra.mxu0 %v4327_v13  ;;  %2373 = vmatpush1.bf16.msra.mxu1 %v4330_v0  ;;  %v4402_v13 = vld [vmem:[#allocation6 + $0x3c0] ss:$16 sps:$4 sm:$0xff]   ;;  %v4407_v0 = vld [vmem:[#allocation6 + $0x1e4] ss:$16 sps:$4 sm:$0xff]  }
 0x24c   : > { %2333 = vmatprep.subr.bf16.mxu0 %v4335_v14  ;;  %2374 = vmatprep.subr.bf16.mxu1 %v4338_v15  ;;  %v4410_v14 = vld [vmem:[#allocation6 + $0x3e4] ss:$16 sps:$4 sm:$0xff]   ;;  %v4405_v15 = vld [vmem:[#allocation6 + $0x1e0] ss:$16 sps:$4 sm:$0xff]  }
 0x24f   : > { %2334 = vmatpush1.bf16.msra.mxu0 %v4333_v43  ;;  %2375 = vmatpush1.bf16.msra.mxu1 %v4336_v3  ;;  %v4413_v43 = vld [vmem:[#allocation6 + $0xc] ss:$16 sps:$4 sm:$0xff]  }
 0x250   : > { %2335 = vmatprep.subr.bf16.mxu0 %v4341_v21  ;;  %2376 = vmatprep.subr.bf16.mxu1 %v4344_v24  ;;  %v4416_v3 = vld [vmem:[#allocation6 + $0x20c] ss:$16 sps:$4 sm:$0xff]   ;;  %v1220_v21 = vld [vmem:[%s5660_s7] sm:$0xf] }
 0x251   : > { %v1321_v24 = vrot.slane %v1220_v21, %v5163_v25  ;;  %v1329_v44 = vrot.slane %v1220_v21, %v5167_v32  ;;  %v1325_v5 = vrot.slane %v1220_v21, %v5165_v29  ;;  %v1333_v16 = vrot.slane %v1220_v21, %v5216_v10  ;;  %v4467_v21 = vld [vmem:[#allocation6 + $0x12c] ss:$16 sps:$4 sm:$0xff]  }
 0x253   : > { %2336 = vmatpush1.bf16.msra.mxu0 %v4339_v26  ;;  %2377 = vmatpush1.bf16.msra.mxu1 %v4342_v28 }
 0x254   : > { %2337 = vmatprep.subr.bf16.mxu0 %v4347_v61  ;;  %2378 = vmatprep.subr.bf16.mxu1 %v4350_v31 }
 0x257   : > { %2338 = vmatpush1.bf16.msra.mxu0 %v4345_v27  ;;  %2379 = vmatpush1.bf16.msra.mxu1 %v4348_v47 }
 0x258   : > { %2339 = vmatprep.subr.bf16.mxu0 %v4353_v33  ;;  %2380 = vmatprep.subr.bf16.mxu1 %v4356_v34 }
 0x25b   : > { %2340 = vmatpush1.bf16.msra.mxu0 %v4351_v48  ;;  %2381 = vmatpush1.bf16.msra.mxu1 %v4354_v2 }
 0x25c   : > { %2341 = vmatprep.subr.bf16.mxu0 %v4359_v35  ;;  %2382 = vmatprep.subr.bf16.mxu1 %v4362_v6 }
 0x25f   : > { %2342 = vmatpush1.bf16.msra.mxu0 %v4357_v7  ;;  %2383 = vmatpush1.bf16.msra.mxu1 %v4360_v38  ;;  %v4411_v7 = vld [vmem:[#allocation6 + $0x8] ss:$16 sps:$4 sm:$0xff]  }
 0x260   : > { %2343 = vmatprep.subr.bf16.mxu0 %v4365_v36  ;;  %2384 = vmatprep.subr.bf16.mxu1 %v4368_v19  ;;  %v4414_v38 = vld [vmem:[#allocation6 + $0x208] ss:$16 sps:$4 sm:$0xff]  }
 0x263   : > { %2344 = vmatpush1.bf16.msra.mxu0 %v4363_v39  ;;  %2385 = vmatpush1.bf16.msra.mxu1 %v4366_v20  ;;  %v4419_v39 = vld [vmem:[#allocation6 + $0x2c] ss:$16 sps:$4 sm:$0xff]  }
 0x264   : > { %2345 = vmatprep.subr.bf16.mxu0 %v4371_v40  ;;  %2386 = vmatprep.subr.bf16.mxu1 %v4374_v49  ;;  %v4422_v20 = vld [vmem:[#allocation6 + $0x22c] ss:$16 sps:$4 sm:$0xff]   ;;  %v4417_v40 = vld [vmem:[#allocation6 + $0x28] ss:$16 sps:$4 sm:$0xff]  }
 0x265   : > { %v4420_v49 = vld [vmem:[#allocation6 + $0x228] ss:$16 sps:$4 sm:$0xff]  }
 0x267   : > { %2346 = vmatpush1.bf16.msra.mxu0 %v4369_v51  ;;  %2387 = vmatpush1.bf16.msra.mxu1 %v4372_v37  ;;  %v4425_v51 = vld [vmem:[#allocation6 + $0x4c] ss:$16 sps:$4 sm:$0xff]  }
 0x268   : > { %2347 = vmatprep.subr.bf16.mxu0 %v4377_v59  ;;  %2388 = vmatprep.subr.bf16.mxu1 %v4380_v41  ;;  %v4428_v37 = vld [vmem:[#allocation6 + $0x24c] ss:$16 sps:$4 sm:$0xff]   ;;  %v4423_v59 = vld [vmem:[#allocation6 + $0x48] ss:$16 sps:$4 sm:$0xff]  }
 0x269   : > { %v4426_v41 = vld [vmem:[#allocation6 + $0x248] ss:$16 sps:$4 sm:$0xff]  }
 0x26b   : > { %2348 = vmatpush1.bf16.msra.mxu0 %v4375_v63  ;;  %2389 = vmatpush1.bf16.msra.mxu1 %v4378_v53  ;;  %v4431_v63 = vld [vmem:[#allocation6 + $0x6c] ss:$16 sps:$4 sm:$0xff]  }
 0x26c   : > { %2349 = vmatprep.subr.bf16.mxu0 %v4383_v54  ;;  %2390 = vmatprep.subr.bf16.mxu1 %v4386_v22  ;;  %v4434_v53 = vld [vmem:[#allocation6 + $0x26c] ss:$16 sps:$4 sm:$0xff]   ;;  %v4429_v54 = vld [vmem:[#allocation6 + $0x68] ss:$16 sps:$4 sm:$0xff]  }
 0x26d   : > { %v4432_v22 = vld [vmem:[#allocation6 + $0x268] ss:$16 sps:$4 sm:$0xff]  }
 0x26f   : > { %2350 = vmatpush1.bf16.msra.mxu0 %v4381_v62  ;;  %2391 = vmatpush1.bf16.msra.mxu1 %v4384_v52  ;;  %v4437_v62 = vld [vmem:[#allocation6 + $0x8c] ss:$16 sps:$4 sm:$0xff]  }
 0x270   : > { %2351 = vmatprep.subr.bf16.mxu0 %v4389_v46  ;;  %2392 = vmatprep.subr.bf16.mxu1 %v4392_v55  ;;  %v4440_v52 = vld [vmem:[#allocation6 + $0x28c] ss:$16 sps:$4 sm:$0xff]   ;;  %v4435_v46 = vld [vmem:[#allocation6 + $0x88] ss:$16 sps:$4 sm:$0xff]  }
 0x271   : > { %v4438_v55 = vld [vmem:[#allocation6 + $0x288] ss:$16 sps:$4 sm:$0xff]  }
 0x273   : > { %2352 = vmatpush1.bf16.msra.mxu0 %v4387_v23  ;;  %2393 = vmatpush1.bf16.msra.mxu1 %v4390_v56  ;;  %v4443_v23 = vld [vmem:[#allocation6 + $0xac] ss:$16 sps:$4 sm:$0xff]  }
 0x274   : > { %2353 = vmatprep.subr.bf16.mxu0 %v4395_v12  ;;  %2394 = vmatprep.subr.bf16.mxu1 %v4398_v57  ;;  %v4446_v56 = vld [vmem:[#allocation6 + $0x2ac] ss:$16 sps:$4 sm:$0xff]   ;;  %v4441_v12 = vld [vmem:[#allocation6 + $0xa8] ss:$16 sps:$4 sm:$0xff]  }
 0x275   : > { %v4444_v57 = vld [vmem:[#allocation6 + $0x2a8] ss:$16 sps:$4 sm:$0xff]  }
 0x277   : > { %2354 = vmatpush1.bf16.msra.mxu0 %v4393_v58  ;;  %2395 = vmatpush1.bf16.msra.mxu1 %v4396_v8  ;;  %v4449_v58 = vld [vmem:[#allocation6 + $0xcc] ss:$16 sps:$4 sm:$0xff]  }
 0x278   : > { %2355 = vmatprep.subr.bf16.mxu0 %v4401_v4  ;;  %2396 = vmatprep.subr.bf16.mxu1 %v4404_v9  ;;  %v4452_v8 = vld [vmem:[#allocation6 + $0x2cc] ss:$16 sps:$4 sm:$0xff]   ;;  %v4447_v4 = vld [vmem:[#allocation6 + $0xc8] ss:$16 sps:$4 sm:$0xff]  }
 0x279   : > { %v4450_v9 = vld [vmem:[#allocation6 + $0x2c8] ss:$16 sps:$4 sm:$0xff]  }
 0x27b   : > { %2356 = vmatpush1.bf16.msra.mxu0 %v4399_v11  ;;  %2397 = vmatpush1.bf16.msra.mxu1 %v4402_v13  ;;  %v4455_v11 = vld [vmem:[#allocation6 + $0xec] ss:$16 sps:$4 sm:$0xff]  }
 0x27c   : > { %2357 = vmatprep.subr.bf16.mxu0 %v4407_v0  ;;  %2398 = vmatprep.subr.bf16.mxu1 %v4410_v14  ;;  %v4458_v13 = vld [vmem:[#allocation6 + $0x2ec] ss:$16 sps:$4 sm:$0xff]   ;;  %v4453_v0 = vld [vmem:[#allocation6 + $0xe8] ss:$16 sps:$4 sm:$0xff]  }
 0x27d   : > { %v4456_v14 = vld [vmem:[#allocation6 + $0x2e8] ss:$16 sps:$4 sm:$0xff]  }
 0x27f   : > { %2358 = vmatpush1.bf16.msra.mxu0 %v4405_v15  ;;  %2399 = vmatpush1.bf16.msra.mxu1 %v4408_v17  ;;  %v4461_v15 = vld [vmem:[#allocation6 + $0x10c] ss:$16 sps:$4 sm:$0xff]  }
 0x280   : > { %2409 = vmatprep.subr.bf16.mxu0 %v4413_v43  ;;  %2450 = vmatprep.subr.bf16.mxu1 %v4416_v3  ;;  %v4464_v17 = vld [vmem:[#allocation6 + $0x30c] ss:$16 sps:$4 sm:$0xff]   ;;  %v4459_v43 = vld [vmem:[#allocation6 + $0x108] ss:$16 sps:$4 sm:$0xff]  }
 0x281   : > { %v4462_v3 = vld [vmem:[#allocation6 + $0x308] ss:$16 sps:$4 sm:$0xff]  }
 0x315   : > { %v1375_v26 = vpop.f32.mrb[4].mxu0  ;;  %v1416_v28 = vpop.f32.mrb[4].mxu1 }
 0x316   : > { %v1376_v60 = vadd.f32 %v1375_v26, %v1321_v24  ;;  %v1417_v30 = vadd.f32 %v1416_v28, %v1329_v44  ;;  %v1377_v61 = vpop.f32.mrb[5].mxu0  ;;  %v1418_v31 = vpop.f32.mrb[5].mxu1  ;;  %v4470_v24 = vld [vmem:[#allocation6 + $0x32c] ss:$16 sps:$4 sm:$0xff]   ;;  %v4465_v44 = vld [vmem:[#allocation6 + $0x128] ss:$16 sps:$4 sm:$0xff]  }
 0x317   : > { %v1378_v27 = vadd.f32 %v1377_v61, %v1325_v5  ;;  %v1419_v47 = vadd.f32 %v1418_v31, %v1333_v16  ;;  %v1379_v33 = vpop.f32.mrb[6].mxu0  ;;  %v1420_v34 = vpop.f32.mrb[6].mxu1  ;;  %v4468_v5 = vld [vmem:[#allocation6 + $0x328] ss:$16 sps:$4 sm:$0xff]   ;;  %v4473_v16 = vld [vmem:[#allocation6 + $0x14c] ss:$16 sps:$4 sm:$0xff]  }
 0x318   : > { %v1380_v48 = vpop.f32.mrb[7].mxu0  ;;  %v1421_v2 = vpop.f32.mrb[7].mxu1  ;;  %v5454_v36 = vpack.c.bf16 %v1376_v60, %v1376_v60  ;;  %v5456_v19 = vpack.c.bf16 %v1417_v30, %v1417_v30  ;;  %v4476_v26 = vld [vmem:[#allocation6 + $0x34c] ss:$16 sps:$4 sm:$0xff]   ;;  %v4471_v28 = vld [vmem:[#allocation6 + $0x148] ss:$16 sps:$4 sm:$0xff]  }
 0x319   : > { %v1556_v35 = vpack.c.bf16 %v1378_v27, %v1378_v27  ;;  %v1558_v6 = vpack.c.bf16 %v1419_v47, %v1419_v47  ;;  %v4474_v60 = vld [vmem:[#allocation6 + $0x348] ss:$16 sps:$4 sm:$0xff]   ;;  %v4479_v30 = vld [vmem:[#allocation6 + $0x16c] ss:$16 sps:$4 sm:$0xff]  }
 0x31a   : > { %v4482_v61 = vld [vmem:[#allocation6 + $0x36c] ss:$16 sps:$4 sm:$0xff]   ;;  %v4477_v31 = vld [vmem:[#allocation6 + $0x168] ss:$16 sps:$4 sm:$0xff]  }
 0x31b   : > { %2359 = vmatprep.mubr.bf16.mxu0 %v1556_v35  ;;  %2400 = vmatprep.mubr.bf16.mxu1 %v1558_v6  ;;  %v4480_v27 = vld [vmem:[#allocation6 + $0x368] ss:$16 sps:$4 sm:$0xff]   ;;  %v4485_v47 = vld [vmem:[#allocation6 + $0x18c] ss:$16 sps:$4 sm:$0xff]  }
 0x31c   : > { %2360 = vmatmul.mubr.bf16.vlgmr.msra.gmra.mrb[8].mxu0 %v5454_v36  ;;  %2401 = vmatmul.mubr.bf16.vlgmr.msra.gmra.mrb[8].mxu1 %v5456_v19  ;;  %v4488_v33 = vld [vmem:[#allocation6 + $0x38c] ss:$16 sps:$4 sm:$0xff]   ;;  %v4483_v34 = vld [vmem:[#allocation6 + $0x188] ss:$16 sps:$4 sm:$0xff]  }
 0x31d   : > { %2410 = vmatpush1.bf16.msra.mxu0 %v4411_v7  ;;  %2451 = vmatpush1.bf16.msra.mxu1 %v4414_v38  ;;  %v4486_v48 = vld [vmem:[#allocation6 + $0x388] ss:$16 sps:$4 sm:$0xff]   ;;  %v4491_v2 = vld [vmem:[#allocation6 + $0x1ac] ss:$16 sps:$4 sm:$0xff]  }
 0x31e   : > { %2441 = vmatprep.mubr.bf16.mxu0 %v1556_v35  ;;  %2482 = vmatprep.mubr.bf16.mxu1 %v1558_v6  ;;  %v4494_v35 = vld [vmem:[#allocation6 + $0x3ac] ss:$16 sps:$4 sm:$0xff]   ;;  %v4489_v6 = vld [vmem:[#allocation6 + $0x1a8] ss:$16 sps:$4 sm:$0xff]  }
 0x31f   : > { %2411 = vmatprep.subr.bf16.mxu0 %v4419_v39  ;;  %2452 = vmatprep.subr.bf16.mxu1 %v4422_v20  ;;  %v4492_v7 = vld [vmem:[#allocation6 + $0x3a8] ss:$16 sps:$4 sm:$0xff]   ;;  %v4497_v38 = vld [vmem:[#allocation6 + $0x1cc] ss:$16 sps:$4 sm:$0xff]  }
 0x320   : > { %v4500_v39 = vld [vmem:[#allocation6 + $0x3cc] ss:$16 sps:$4 sm:$0xff]   ;;  %v4495_v20 = vld [vmem:[#allocation6 + $0x1c8] ss:$16 sps:$4 sm:$0xff]  }
 0x321   : > { %2412 = vmatpush1.bf16.msra.mxu0 %v4417_v40  ;;  %2453 = vmatpush1.bf16.msra.mxu1 %v4420_v49  ;;  %v4498_v40 = vld [vmem:[#allocation6 + $0x3c8] ss:$16 sps:$4 sm:$0xff]   ;;  %v4503_v49 = vld [vmem:[#allocation6 + $0x1ec] ss:$16 sps:$4 sm:$0xff]  }
 0x322   : > { %2413 = vmatprep.subr.bf16.mxu0 %v4425_v51  ;;  %2454 = vmatprep.subr.bf16.mxu1 %v4428_v37  ;;  %v4506_v51 = vld [vmem:[#allocation6 + $0x3ec] ss:$16 sps:$4 sm:$0xff]   ;;  %v1093_v37 = vrot.slane %v5435_v42, %v5165_v29 }
 0x325   : > { %2414 = vmatpush1.bf16.msra.mxu0 %v4423_v59  ;;  %2455 = vmatpush1.bf16.msra.mxu1 %v4426_v41  ;;  %v1101_v59 = vrot.slane %v5435_v42, %v5216_v10  ;;  %v4501_v41 = vld [vmem:[#allocation6 + $0x1e8] ss:$16 sps:$4 sm:$0xff]  }
 0x326   : > { %2415 = vmatprep.subr.bf16.mxu0 %v4431_v63  ;;  %2456 = vmatprep.subr.bf16.mxu1 %v4434_v53  ;;  %v4504_v63 = vld [vmem:[#allocation6 + $0x3e8] ss:$16 sps:$4 sm:$0xff]   ;;  %v4509_v53 = vld [vmem:[#allocation3 + $0x4] ss:$16 sps:$4 sm:$0xff]  }
 0x329   : > { %2416 = vmatpush1.bf16.msra.mxu0 %v4429_v54  ;;  %2457 = vmatpush1.bf16.msra.mxu1 %v4432_v22  ;;  %v4512_v54 = vld [vmem:[#allocation3 + $0x204] ss:$16 sps:$4 sm:$0xff]   ;;  %v1147_v22 = vadd.f32 %v5441_v18, %v1093_v37  ;;  %v4513_v18 = vld [vmem:[#allocation3 + $0x20] ss:$16 sps:$4 sm:$0xff]  }
 0x32a   : > { %2417 = vmatprep.subr.bf16.mxu0 %v4437_v62  ;;  %2458 = vmatprep.subr.bf16.mxu1 %v4440_v52  ;;  %v1188_v62 = vadd.f32 %v5445_v50, %v1101_v59  ;;  %v4507_v52 = vld [vmem:[#allocation3] ss:$16 sps:$4 sm:$0xff]   ;;  %v4584_v37 = vld [vmem:[#allocation3 + $0x384] ss:$16 sps:$4 sm:$0xff]  }
 0x32b   : > { %v4516_v50 = vld [vmem:[#allocation3 + $0x220] ss:$16 sps:$4 sm:$0xff]  }
 0x32c   : > { %v4579_v59 = vld [vmem:[#allocation3 + $0x180] ss:$16 sps:$4 sm:$0xff]  }
 0x32d   : > { %2418 = vmatpush1.bf16.msra.mxu0 %v4435_v46  ;;  %2459 = vmatpush1.bf16.msra.mxu1 %v4438_v55  ;;  %v4510_v46 = vld [vmem:[#allocation3 + $0x200] ss:$16 sps:$4 sm:$0xff]   ;;  %v5466_v55 = vpack.c.bf16 %v1147_v22, %v1147_v22 }
 0x32e   : > { %2419 = vmatprep.subr.bf16.mxu0 %v4443_v23  ;;  %2460 = vmatprep.subr.bf16.mxu1 %v4446_v56  ;;  %v4515_v23 = vld [vmem:[#allocation3 + $0x24] ss:$16 sps:$4 sm:$0xff]   ;;  %v4588_v22 = vld [vmem:[#allocation3 + $0x3a0] ss:$16 sps:$4 sm:$0xff]  }
 0x32f   : > { %v4518_v56 = vld [vmem:[#allocation3 + $0x224] ss:$16 sps:$4 sm:$0xff]  }
 0x331   : > { %2420 = vmatpush1.bf16.msra.mxu0 %v4441_v12  ;;  %2461 = vmatpush1.bf16.msra.mxu1 %v4444_v57  ;;  %v5468_v12 = vpack.c.bf16 %v1188_v62, %v1188_v62  ;;  %v4521_v57 = vld [vmem:[#allocation3 + $0x44] ss:$16 sps:$4 sm:$0xff]  }
 0x332   : > { %2421 = vmatprep.subr.bf16.mxu0 %v4449_v58  ;;  %2462 = vmatprep.subr.bf16.mxu1 %v4452_v8  ;;  %v4524_v58 = vld [vmem:[#allocation3 + $0x244] ss:$16 sps:$4 sm:$0xff]   ;;  %v4519_v8 = vld [vmem:[#allocation3 + $0x40] ss:$16 sps:$4 sm:$0xff]  }
 0x333   : > { %v4593_v62 = vld [vmem:[#allocation3 + $0x1c4] ss:$16 sps:$4 sm:$0xff]  }
 0x335   : > { %2422 = vmatpush1.bf16.msra.mxu0 %v4447_v4  ;;  %2463 = vmatpush1.bf16.msra.mxu1 %v4450_v9  ;;  %v4522_v4 = vld [vmem:[#allocation3 + $0x240] ss:$16 sps:$4 sm:$0xff]  }
 0x336   : > { %2423 = vmatprep.subr.bf16.mxu0 %v4455_v11  ;;  %2464 = vmatprep.subr.bf16.mxu1 %v4458_v13  ;;  %v4525_v9 = vld [vmem:[#allocation3 + $0x60] ss:$16 sps:$4 sm:$0xff]   ;;  %v4533_v13 = vld [vmem:[#allocation3 + $0x84] ss:$16 sps:$4 sm:$0xff]  }
 0x337   : > { %v4528_v11 = vld [vmem:[#allocation3 + $0x260] ss:$16 sps:$4 sm:$0xff]  }
 0x339   : > { %2424 = vmatpush1.bf16.msra.mxu0 %v4453_v0  ;;  %2465 = vmatpush1.bf16.msra.mxu1 %v4456_v14  ;;  %v4536_v0 = vld [vmem:[#allocation3 + $0x284] ss:$16 sps:$4 sm:$0xff]   ;;  %v4531_v14 = vld [vmem:[#allocation3 + $0x80] ss:$16 sps:$4 sm:$0xff]  }
 0x33a   : > { %2425 = vmatprep.subr.bf16.mxu0 %v4461_v15  ;;  %2466 = vmatprep.subr.bf16.mxu1 %v4464_v17  ;;  %v4534_v15 = vld [vmem:[#allocation3 + $0x280] ss:$16 sps:$4 sm:$0xff]   ;;  %v4539_v17 = vld [vmem:[#allocation3 + $0xa4] ss:$16 sps:$4 sm:$0xff]  }
 0x33d   : > { %2426 = vmatpush1.bf16.msra.mxu0 %v4459_v43  ;;  %2467 = vmatpush1.bf16.msra.mxu1 %v4462_v3  ;;  %v4542_v43 = vld [vmem:[#allocation3 + $0x2a4] ss:$16 sps:$4 sm:$0xff]   ;;  %v4537_v3 = vld [vmem:[#allocation3 + $0xa0] ss:$16 sps:$4 sm:$0xff]  }
 0x33e   : > { %2427 = vmatprep.subr.bf16.mxu0 %v4467_v21  ;;  %2468 = vmatprep.subr.bf16.mxu1 %v4470_v24  ;;  %v4540_v21 = vld [vmem:[#allocation3 + $0x2a0] ss:$16 sps:$4 sm:$0xff]   ;;  %v4545_v24 = vld [vmem:[#allocation3 + $0xc4] ss:$16 sps:$4 sm:$0xff]  }
 0x341   : > { %2428 = vmatpush1.bf16.msra.mxu0 %v4465_v44  ;;  %2469 = vmatpush1.bf16.msra.mxu1 %v4468_v5  ;;  %v4548_v44 = vld [vmem:[#allocation3 + $0x2c4] ss:$16 sps:$4 sm:$0xff]   ;;  %v4543_v5 = vld [vmem:[#allocation3 + $0xc0] ss:$16 sps:$4 sm:$0xff]  }
 0x342   : > { %2429 = vmatprep.subr.bf16.mxu0 %v4473_v16  ;;  %2470 = vmatprep.subr.bf16.mxu1 %v4476_v26  ;;  %v4546_v16 = vld [vmem:[#allocation3 + $0x2c0] ss:$16 sps:$4 sm:$0xff]   ;;  %v4551_v26 = vld [vmem:[#allocation3 + $0xe4] ss:$16 sps:$4 sm:$0xff]  }
 0x345   : > { %2430 = vmatpush1.bf16.msra.mxu0 %v4471_v28  ;;  %2471 = vmatpush1.bf16.msra.mxu1 %v4474_v60  ;;  %v4554_v28 = vld [vmem:[#allocation3 + $0x2e4] ss:$16 sps:$4 sm:$0xff]   ;;  %v4549_v60 = vld [vmem:[#allocation3 + $0xe0] ss:$16 sps:$4 sm:$0xff]  }
 0x346   : > { %2431 = vmatprep.subr.bf16.mxu0 %v4479_v30  ;;  %2472 = vmatprep.subr.bf16.mxu1 %v4482_v61  ;;  %v4552_v30 = vld [vmem:[#allocation3 + $0x2e0] ss:$16 sps:$4 sm:$0xff]   ;;  %v4557_v61 = vld [vmem:[#allocation3 + $0x104] ss:$16 sps:$4 sm:$0xff]  }
 0x349   : > { %2432 = vmatpush1.bf16.msra.mxu0 %v4477_v31  ;;  %2473 = vmatpush1.bf16.msra.mxu1 %v4480_v27  ;;  %v4560_v31 = vld [vmem:[#allocation3 + $0x304] ss:$16 sps:$4 sm:$0xff]   ;;  %v4555_v27 = vld [vmem:[#allocation3 + $0x100] ss:$16 sps:$4 sm:$0xff]  }
 0x34a   : > { %2433 = vmatprep.subr.bf16.mxu0 %v4485_v47  ;;  %2474 = vmatprep.subr.bf16.mxu1 %v4488_v33  ;;  %v4558_v47 = vld [vmem:[#allocation3 + $0x300] ss:$16 sps:$4 sm:$0xff]   ;;  %v4563_v33 = vld [vmem:[#allocation3 + $0x124] ss:$16 sps:$4 sm:$0xff]  }
 0x34d   : > { %2434 = vmatpush1.bf16.msra.mxu0 %v4483_v34  ;;  %2475 = vmatpush1.bf16.msra.mxu1 %v4486_v48  ;;  %v4566_v34 = vld [vmem:[#allocation3 + $0x324] ss:$16 sps:$4 sm:$0xff]   ;;  %v4561_v48 = vld [vmem:[#allocation3 + $0x120] ss:$16 sps:$4 sm:$0xff]  }
 0x34e   : > { %2435 = vmatprep.subr.bf16.mxu0 %v4491_v2  ;;  %2476 = vmatprep.subr.bf16.mxu1 %v4494_v35  ;;  %v4564_v2 = vld [vmem:[#allocation3 + $0x320] ss:$16 sps:$4 sm:$0xff]   ;;  %v4569_v35 = vld [vmem:[#allocation3 + $0x144] ss:$16 sps:$4 sm:$0xff]  }
 0x351   : > { %2436 = vmatpush1.bf16.msra.mxu0 %v4489_v6  ;;  %2477 = vmatpush1.bf16.msra.mxu1 %v4492_v7  ;;  %v4572_v6 = vld [vmem:[#allocation3 + $0x344] ss:$16 sps:$4 sm:$0xff]   ;;  %v4567_v7 = vld [vmem:[#allocation3 + $0x140] ss:$16 sps:$4 sm:$0xff]  }
 0x352   : > { %2437 = vmatprep.subr.bf16.mxu0 %v4497_v38  ;;  %2478 = vmatprep.subr.bf16.mxu1 %v4500_v39  ;;  %v4570_v38 = vld [vmem:[#allocation3 + $0x340] ss:$16 sps:$4 sm:$0xff]   ;;  %v4575_v39 = vld [vmem:[#allocation3 + $0x164] ss:$16 sps:$4 sm:$0xff]  }
 0x355   : > { %2438 = vmatpush1.bf16.msra.mxu0 %v4495_v20  ;;  %2479 = vmatpush1.bf16.msra.mxu1 %v4498_v40  ;;  %v4578_v20 = vld [vmem:[#allocation3 + $0x364] ss:$16 sps:$4 sm:$0xff]   ;;  %v4573_v40 = vld [vmem:[#allocation3 + $0x160] ss:$16 sps:$4 sm:$0xff]  }
 0x356   : > { %2439 = vmatprep.subr.bf16.mxu0 %v4503_v49  ;;  %2480 = vmatprep.subr.bf16.mxu1 %v4506_v51  ;;  %v4576_v49 = vld [vmem:[#allocation3 + $0x360] ss:$16 sps:$4 sm:$0xff]   ;;  %v4581_v51 = vld [vmem:[#allocation3 + $0x184] ss:$16 sps:$4 sm:$0xff]  }
 0x359   : > { %2440 = vmatpush1.bf16.msra.mxu0 %v4501_v41  ;;  %2481 = vmatpush1.bf16.msra.mxu1 %v4504_v63  ;;  %v4582_v41 = vld [vmem:[#allocation3 + $0x380] ss:$16 sps:$4 sm:$0xff]   ;;  %v4587_v63 = vld [vmem:[#allocation3 + $0x1a4] ss:$16 sps:$4 sm:$0xff]  }
 0x35a   : > { %3131 = vmatprep.subr.bf16.mxu0 %v4509_v53  ;;  %3172 = vmatprep.subr.bf16.mxu1 %v4512_v54  ;;  %v4590_v53 = vld [vmem:[#allocation3 + $0x3a4] ss:$16 sps:$4 sm:$0xff]   ;;  %v4585_v54 = vld [vmem:[#allocation3 + $0x1a0] ss:$16 sps:$4 sm:$0xff]  }
 0x35c   : > { %2442 = vmatmul.mubr.bf16.vlgmr.msra.gmra.mrb[12].mxu0 %v5454_v36  ;;  %2483 = vmatmul.mubr.bf16.vlgmr.msra.gmra.mrb[12].mxu1 %v5456_v19  ;;  %v4527_v36 = vld [vmem:[#allocation3 + $0x64] ss:$16 sps:$4 sm:$0xff]  }
 0x35d   : > { %3132 = vmatpush1.bf16.msra.mxu0 %v4507_v52  ;;  %3163 = vmatprep.mubr.bf16.mxu0 %v5466_v55  ;;  %v4530_v19 = vld [vmem:[#allocation3 + $0x264] ss:$16 sps:$4 sm:$0xff]  }
 0x35e   : > { %3173 = vmatpush1.bf16.msra.mxu1 %v4510_v46  ;;  %3204 = vmatprep.mubr.bf16.mxu1 %v5468_v12  ;;  %v4596_v52 = vld [vmem:[#allocation3 + $0x3c4] ss:$16 sps:$4 sm:$0xff]   ;;  %v4591_v46 = vld [vmem:[#allocation3 + $0x1c0] ss:$16 sps:$4 sm:$0xff]  }
 0x35f   : > { %3133 = vmatprep.subr.bf16.mxu0 %v4515_v23  ;;  %3174 = vmatprep.subr.bf16.mxu1 %v4518_v56  ;;  %v1089_v23 = vrot.slane %v5435_v42, %v5163_v25  ;;  %v4594_v56 = vld [vmem:[#allocation3 + $0x3c0] ss:$16 sps:$4 sm:$0xff]   ;;  %v4606_v42 = vld [vmem:[#allocation3 + $0x208] ss:$16 sps:$4 sm:$0xff]  }
 0x361   : > { %3134 = vmatpush1.bf16.msra.mxu0 %v4513_v18  ;;  %v4599_v18 = vld [vmem:[#allocation3 + $0x1e4] ss:$16 sps:$4 sm:$0xff]  }
 0x362   : > { %3175 = vmatpush1.bf16.msra.mxu1 %v4516_v50  ;;  %3135 = vmatprep.subr.bf16.mxu0 %v4521_v57  ;;  %v4602_v50 = vld [vmem:[#allocation3 + $0x3e4] ss:$16 sps:$4 sm:$0xff]   ;;  %v4597_v57 = vld [vmem:[#allocation3 + $0x1e0] ss:$16 sps:$4 sm:$0xff]  }
 0x363   : > { %3176 = vmatprep.subr.bf16.mxu1 %v4524_v58  ;;  %v1145_v58 = vadd.f32 %v5439_v1, %v1089_v23  ;;  %v4614_v1 = vld [vmem:[#allocation3 + $0x22c] ss:$16 sps:$4 sm:$0xff]   ;;  %v4678_v23 = vld [vmem:[#allocation3 + $0x388] ss:$16 sps:$4 sm:$0xff]  }
 0x365   : > { %3136 = vmatpush1.bf16.msra.mxu0 %v4519_v8  ;;  %v4600_v8 = vld [vmem:[#allocation3 + $0x3e0] ss:$16 sps:$4 sm:$0xff]  }
 0x366   : > { %3177 = vmatpush1.bf16.msra.mxu1 %v4522_v4  ;;  %3137 = vmatprep.subr.bf16.mxu0 %v4527_v36  ;;  %v4605_v4 = vld [vmem:[#allocation3 + $0xc] ss:$16 sps:$4 sm:$0xff]  }
 0x367   : > { %3178 = vmatprep.subr.bf16.mxu1 %v4530_v19  ;;  %v4608_v36 = vld [vmem:[#allocation3 + $0x20c] ss:$16 sps:$4 sm:$0xff]   ;;  %v4603_v19 = vld [vmem:[#allocation3 + $0x8] ss:$16 sps:$4 sm:$0xff]  }
 0x369   : > { %3138 = vmatpush1.bf16.msra.mxu0 %v4525_v9  ;;  %v5477_v9 = vpack.c.bf16 %v1145_v58, %v1145_v58  ;;  %v4689_v58 = vld [vmem:[#allocation3 + $0x1cc] ss:$16 sps:$4 sm:$0xff]  }
 0x36a   : > { %3179 = vmatpush1.bf16.msra.mxu1 %v4528_v11  ;;  %3139 = vmatprep.subr.bf16.mxu0 %v4533_v13  ;;  %v5481_v11 = vpack.c.bf16 %v5443_v45, %v5443_v45  ;;  %v4611_v13 = vld [vmem:[#allocation3 + $0x2c] ss:$16 sps:$4 sm:$0xff]   ;;  %v4615_v45 = vld [vmem:[#allocation3 + $0x48] ss:$16 sps:$4 sm:$0xff]  }
 0x36b   : > { %3180 = vmatprep.subr.bf16.mxu1 %v4536_v0  ;;  %v4609_v0 = vld [vmem:[#allocation3 + $0x28] ss:$16 sps:$4 sm:$0xff]  }
 0x36d   : > { %3140 = vmatpush1.bf16.msra.mxu0 %v4531_v14  ;;  %v4612_v14 = vld [vmem:[#allocation3 + $0x228] ss:$16 sps:$4 sm:$0xff]  }
 0x36e   : > { %3181 = vmatpush1.bf16.msra.mxu1 %v4534_v15  ;;  %3141 = vmatprep.subr.bf16.mxu0 %v4539_v17  ;;  %v4617_v15 = vld [vmem:[#allocation3 + $0x4c] ss:$16 sps:$4 sm:$0xff]  }
 0x36f   : > { %3182 = vmatprep.subr.bf16.mxu1 %v4542_v43  ;;  %v4620_v17 = vld [vmem:[#allocation3 + $0x24c] ss:$16 sps:$4 sm:$0xff]   ;;  %v4618_v43 = vld [vmem:[#allocation3 + $0x248] ss:$16 sps:$4 sm:$0xff]  }
 0x371   : > { %3142 = vmatpush1.bf16.msra.mxu0 %v4537_v3  ;;  %v4623_v3 = vld [vmem:[#allocation3 + $0x6c] ss:$16 sps:$4 sm:$0xff]  }
 0x372   : > { %3183 = vmatpush1.bf16.msra.mxu1 %v4540_v21  ;;  %3143 = vmatprep.subr.bf16.mxu0 %v4545_v24  ;;  %v4626_v21 = vld [vmem:[#allocation3 + $0x26c] ss:$16 sps:$4 sm:$0xff]   ;;  %v4621_v24 = vld [vmem:[#allocation3 + $0x68] ss:$16 sps:$4 sm:$0xff]  }
 0x373   : > { %3184 = vmatprep.subr.bf16.mxu1 %v4548_v44  ;;  %v4629_v44 = vld [vmem:[#allocation3 + $0x8c] ss:$16 sps:$4 sm:$0xff]  }
 0x375   : > { %3144 = vmatpush1.bf16.msra.mxu0 %v4543_v5  ;;  %v4632_v5 = vld [vmem:[#allocation3 + $0x28c] ss:$16 sps:$4 sm:$0xff]  }
 0x376   : > { %3185 = vmatpush1.bf16.msra.mxu1 %v4546_v16  ;;  %3145 = vmatprep.subr.bf16.mxu0 %v4551_v26  ;;  %v4630_v16 = vld [vmem:[#allocation3 + $0x288] ss:$16 sps:$4 sm:$0xff]   ;;  %v4635_v26 = vld [vmem:[#allocation3 + $0xac] ss:$16 sps:$4 sm:$0xff]  }
 0x377   : > { %3186 = vmatprep.subr.bf16.mxu1 %v4554_v28  ;;  %v4638_v28 = vld [vmem:[#allocation3 + $0x2ac] ss:$16 sps:$4 sm:$0xff]  }
 0x379   : > { %3146 = vmatpush1.bf16.msra.mxu0 %v4549_v60  ;;  %v4633_v60 = vld [vmem:[#allocation3 + $0xa8] ss:$16 sps:$4 sm:$0xff]  }
 0x37a   : > { %3187 = vmatpush1.bf16.msra.mxu1 %v4552_v30  ;;  %3147 = vmatprep.subr.bf16.mxu0 %v4557_v61  ;;  %v4636_v30 = vld [vmem:[#allocation3 + $0x2a8] ss:$16 sps:$4 sm:$0xff]   ;;  %v4641_v61 = vld [vmem:[#allocation3 + $0xcc] ss:$16 sps:$4 sm:$0xff]  }
 0x37b   : > { %3188 = vmatprep.subr.bf16.mxu1 %v4560_v31  ;;  %v4644_v31 = vld [vmem:[#allocation3 + $0x2cc] ss:$16 sps:$4 sm:$0xff]  }
 0x37d   : > { %3148 = vmatpush1.bf16.msra.mxu0 %v4555_v27  ;;  %v4639_v27 = vld [vmem:[#allocation3 + $0xc8] ss:$16 sps:$4 sm:$0xff]  }
 0x37e   : > { %3189 = vmatpush1.bf16.msra.mxu1 %v4558_v47  ;;  %3149 = vmatprep.subr.bf16.mxu0 %v4563_v33  ;;  %v4642_v47 = vld [vmem:[#allocation3 + $0x2c8] ss:$16 sps:$4 sm:$0xff]   ;;  %v4647_v33 = vld [vmem:[#allocation3 + $0xec] ss:$16 sps:$4 sm:$0xff]  }
 0x37f   : > { %3190 = vmatprep.subr.bf16.mxu1 %v4566_v34  ;;  %v4650_v34 = vld [vmem:[#allocation3 + $0x2ec] ss:$16 sps:$4 sm:$0xff]  }
 0x381   : > { %3150 = vmatpush1.bf16.msra.mxu0 %v4561_v48  ;;  %v4645_v48 = vld [vmem:[#allocation3 + $0xe8] ss:$16 sps:$4 sm:$0xff]  }
 0x382   : > { %3191 = vmatpush1.bf16.msra.mxu1 %v4564_v2  ;;  %3151 = vmatprep.subr.bf16.mxu0 %v4569_v35  ;;  %v4648_v2 = vld [vmem:[#allocation3 + $0x2e8] ss:$16 sps:$4 sm:$0xff]   ;;  %v4653_v35 = vld [vmem:[#allocation3 + $0x10c] ss:$16 sps:$4 sm:$0xff]  }
 0x383   : > { %3192 = vmatprep.subr.bf16.mxu1 %v4572_v6  ;;  %v4656_v6 = vld [vmem:[#allocation3 + $0x30c] ss:$16 sps:$4 sm:$0xff]  }
 0x385   : > { %3152 = vmatpush1.bf16.msra.mxu0 %v4567_v7  ;;  %v4651_v7 = vld [vmem:[#allocation3 + $0x108] ss:$16 sps:$4 sm:$0xff]  }
 0x386   : > { %3193 = vmatpush1.bf16.msra.mxu1 %v4570_v38  ;;  %3153 = vmatprep.subr.bf16.mxu0 %v4575_v39  ;;  %v4654_v38 = vld [vmem:[#allocation3 + $0x308] ss:$16 sps:$4 sm:$0xff]   ;;  %v4659_v39 = vld [vmem:[#allocation3 + $0x12c] ss:$16 sps:$4 sm:$0xff]  }
 0x387   : > { %3194 = vmatprep.subr.bf16.mxu1 %v4578_v20  ;;  %v4662_v20 = vld [vmem:[#allocation3 + $0x32c] ss:$16 sps:$4 sm:$0xff]  }
 0x389   : > { %3154 = vmatpush1.bf16.msra.mxu0 %v4573_v40  ;;  %v4657_v40 = vld [vmem:[#allocation3 + $0x128] ss:$16 sps:$4 sm:$0xff]  }
 0x38a   : > { %3195 = vmatpush1.bf16.msra.mxu1 %v4576_v49  ;;  %3155 = vmatprep.subr.bf16.mxu0 %v4581_v51  ;;  %v4660_v49 = vld [vmem:[#allocation3 + $0x328] ss:$16 sps:$4 sm:$0xff]   ;;  %v4665_v51 = vld [vmem:[#allocation3 + $0x14c] ss:$16 sps:$4 sm:$0xff]  }
 0x38b   : > { %3196 = vmatprep.subr.bf16.mxu1 %v4584_v37  ;;  %v4668_v37 = vld [vmem:[#allocation3 + $0x34c] ss:$16 sps:$4 sm:$0xff]  }
 0x38d   : > { %3156 = vmatpush1.bf16.msra.mxu0 %v4579_v59  ;;  %v4663_v59 = vld [vmem:[#allocation3 + $0x148] ss:$16 sps:$4 sm:$0xff]  }
 0x38e   : > { %3197 = vmatpush1.bf16.msra.mxu1 %v4582_v41  ;;  %3157 = vmatprep.subr.bf16.mxu0 %v4587_v63  ;;  %v4666_v41 = vld [vmem:[#allocation3 + $0x348] ss:$16 sps:$4 sm:$0xff]   ;;  %v4671_v63 = vld [vmem:[#allocation3 + $0x16c] ss:$16 sps:$4 sm:$0xff]  }
 0x38f   : > { %3198 = vmatprep.subr.bf16.mxu1 %v4590_v53  ;;  %v4674_v53 = vld [vmem:[#allocation3 + $0x36c] ss:$16 sps:$4 sm:$0xff]  }
 0x391   : > { %3158 = vmatpush1.bf16.msra.mxu0 %v4585_v54  ;;  %v4669_v54 = vld [vmem:[#allocation3 + $0x168] ss:$16 sps:$4 sm:$0xff]  }
 0x392   : > { %3199 = vmatpush1.bf16.msra.mxu1 %v4588_v22  ;;  %3159 = vmatprep.subr.bf16.mxu0 %v4593_v62  ;;  %v4672_v22 = vld [vmem:[#allocation3 + $0x368] ss:$16 sps:$4 sm:$0xff]   ;;  %v4677_v62 = vld [vmem:[#allocation3 + $0x18c] ss:$16 sps:$4 sm:$0xff]  }
 0x393   : > { %3200 = vmatprep.subr.bf16.mxu1 %v4596_v52  ;;  %v4680_v52 = vld [vmem:[#allocation3 + $0x38c] ss:$16 sps:$4 sm:$0xff]  }
 0x395   : > { %3160 = vmatpush1.bf16.msra.mxu0 %v4591_v46  ;;  %v4675_v46 = vld [vmem:[#allocation3 + $0x188] ss:$16 sps:$4 sm:$0xff]  }
 0x396   : > { %3201 = vmatpush1.bf16.msra.mxu1 %v4594_v56  ;;  %3161 = vmatprep.subr.bf16.mxu0 %v4599_v18  ;;  %v4683_v56 = vld [vmem:[#allocation3 + $0x1ac] ss:$16 sps:$4 sm:$0xff]  }
 0x397   : > { %3202 = vmatprep.subr.bf16.mxu1 %v4602_v50  ;;  %v4686_v18 = vld [vmem:[#allocation3 + $0x3ac] ss:$16 sps:$4 sm:$0xff]   ;;  %v4681_v50 = vld [vmem:[#allocation3 + $0x1a8] ss:$16 sps:$4 sm:$0xff]  }
 0x399   : > { %3162 = vmatpush1.bf16.msra.mxu0 %v4597_v57  ;;  %v4684_v57 = vld [vmem:[#allocation3 + $0x3a8] ss:$16 sps:$4 sm:$0xff]  }
 0x39a   : > { %3203 = vmatpush1.bf16.msra.mxu1 %v4600_v8  ;;  %3213 = vmatprep.subr.bf16.mxu0 %v4605_v4  ;;  %v4692_v8 = vld [vmem:[#allocation3 + $0x3cc] ss:$16 sps:$4 sm:$0xff]   ;;  %v4687_v4 = vld [vmem:[#allocation3 + $0x1c8] ss:$16 sps:$4 sm:$0xff]  }
 0x39b   : > { %3254 = vmatprep.subr.bf16.mxu1 %v4608_v36  ;;  %v4690_v36 = vld [vmem:[#allocation3 + $0x3c8] ss:$16 sps:$4 sm:$0xff]  }
 0x39c   : > { %3164 = vmatmul.mubr.bf16.vlgmr.msra.gmra.mrb[16].mxu0 %v5477_v9 }
 0x39d   : > { %3205 = vmatmul.mubr.bf16.vlgmr.msra.gmra.mrb[16].mxu1 %v5481_v11  ;;  %3214 = vmatpush1.bf16.msra.mxu0 %v4603_v19  ;;  %v4695_v19 = vld [vmem:[#allocation3 + $0x1ec] ss:$16 sps:$4 sm:$0xff]  }
 0x39e   : > { %3245 = vmatprep.mubr.bf16.mxu0 %v5466_v55  ;;  %3255 = vmatpush1.bf16.msra.mxu1 %v4606_v42  ;;  %v4624_v55 = vld [vmem:[#allocation3 + $0x268] ss:$16 sps:$4 sm:$0xff]   ;;  %v4698_v42 = vld [vmem:[#allocation3 + $0x3ec] ss:$16 sps:$4 sm:$0xff]  }
 0x39f   : > { %3286 = vmatprep.mubr.bf16.mxu1 %v5468_v12  ;;  %3215 = vmatprep.subr.bf16.mxu0 %v4611_v13  ;;  %v4627_v12 = vld [vmem:[#allocation3 + $0x88] ss:$16 sps:$4 sm:$0xff]  }
 0x3a0   : > { %3256 = vmatprep.subr.bf16.mxu1 %v4614_v1  ;;  %v4693_v13 = vld [vmem:[#allocation3 + $0x1e8] ss:$16 sps:$4 sm:$0xff]  }
 0x3a1   : > { %3216 = vmatpush1.bf16.msra.mxu0 %v4609_v0  ;;  %v4696_v1 = vld [vmem:[#allocation3 + $0x3e8] ss:$16 sps:$4 sm:$0xff]   ;;  %v4699_v0 = vld [vmem:[%s5664_s11 + $0x40] sm:$0xff]  }
 0x3a2   : > { %3257 = vmatpush1.bf16.msra.mxu1 %v4612_v14  ;;  %3217 = vmatprep.subr.bf16.mxu0 %v4617_v15  ;;  %v4700_v14 = vld [vmem:[%s5664_s11] sm:$0xff]   ;;  %v4701_v15 = vld [vmem:[%s5664_s11 + $0x48] sm:$0xff]  }
 0x3a3   : > { %3258 = vmatprep.subr.bf16.mxu1 %v4620_v17  ;;  %v4702_v17 = vld [vmem:[%s5664_s11 + $0x8] sm:$0xff]  }
 0x3a5   : > { %3218 = vmatpush1.bf16.msra.mxu0 %v4615_v45  ;;  %v4703_v45 = vld [vmem:[%s5664_s11 + $0x50] sm:$0xff]  }
 0x3a6   : > { %3259 = vmatpush1.bf16.msra.mxu1 %v4618_v43  ;;  %3219 = vmatprep.subr.bf16.mxu0 %v4623_v3  ;;  %v4704_v43 = vld [vmem:[%s5664_s11 + $0x10] sm:$0xff]   ;;  %v4707_v3 = vld [vmem:[%s5664_s11 + $0x60] sm:$0xff]  }
 0x3a7   : > { %3260 = vmatprep.subr.bf16.mxu1 %v4626_v21  ;;  %v4708_v21 = vld [vmem:[%s5664_s11 + $0x20] sm:$0xff]  }
 0x3a9   : > { %3220 = vmatpush1.bf16.msra.mxu0 %v4621_v24 }
 0x3aa   : > { %3261 = vmatpush1.bf16.msra.mxu1 %v4624_v55  ;;  %3221 = vmatprep.subr.bf16.mxu0 %v4629_v44 }
 0x3ab   : > { %3262 = vmatprep.subr.bf16.mxu1 %v4632_v5 }
 0x3ad   : > { %3222 = vmatpush1.bf16.msra.mxu0 %v4627_v12 }
 0x3ae   : > { %3263 = vmatpush1.bf16.msra.mxu1 %v4630_v16  ;;  %3223 = vmatprep.subr.bf16.mxu0 %v4635_v26  ;;  %v4709_v16 = vld [vmem:[%s5664_s11 + $0x68] sm:$0xff]  }
 0x3af   : > { %3264 = vmatprep.subr.bf16.mxu1 %v4638_v28 }
 0x3b1   : > { %3224 = vmatpush1.bf16.msra.mxu0 %v4633_v60 }
 0x3b2   : > { %3265 = vmatpush1.bf16.msra.mxu1 %v4636_v30  ;;  %3225 = vmatprep.subr.bf16.mxu0 %v4641_v61  ;;  %v4710_v30 = vld [vmem:[%s5664_s11 + $0x28] sm:$0xff]  }
 0x3b3   : > { %3266 = vmatprep.subr.bf16.mxu1 %v4644_v31 }
 0x3b5   : > { %3226 = vmatpush1.bf16.msra.mxu0 %v4639_v27  ;;  %v4711_v27 = vld [vmem:[%s5664_s11 + $0x70] sm:$0xff]  }
 0x3b6   : > { %3267 = vmatpush1.bf16.msra.mxu1 %v4642_v47  ;;  %3227 = vmatprep.subr.bf16.mxu0 %v4647_v33  ;;  %v4712_v47 = vld [vmem:[%s5664_s11 + $0x30] sm:$0xff]   ;;  %v4713_v33 = vld [vmem:[%s5664_s11 + $0x78] sm:$0xff]  }
 0x3b7   : > { %3268 = vmatprep.subr.bf16.mxu1 %v4650_v34  ;;  %v4714_v34 = vld [vmem:[%s5664_s11 + $0x38] sm:$0xff]  }
 0x3b9   : > { %3228 = vmatpush1.bf16.msra.mxu0 %v4645_v48  ;;  %v4715_v48 = vld [vmem:[%s5664_s11 + $0xc0] sm:$0xff]  }
 0x3ba   : > { %3269 = vmatpush1.bf16.msra.mxu1 %v4648_v2  ;;  %3229 = vmatprep.subr.bf16.mxu0 %v4653_v35  ;;  %v4716_v2 = vld [vmem:[%s5664_s11 + $0x80] sm:$0xff]   ;;  %v4717_v35 = vld [vmem:[%s5664_s11 + $0xc8] sm:$0xff]  }
 0x3bb   : > { %3270 = vmatprep.subr.bf16.mxu1 %v4656_v6  ;;  %v4718_v6 = vld [vmem:[%s5664_s11 + $0x88] sm:$0xff]  }
 0x3bd   : > { %3230 = vmatpush1.bf16.msra.mxu0 %v4651_v7  ;;  %v4719_v7 = vld [vmem:[%s5664_s11 + $0xd0] sm:$0xff]  }
 0x3be   : > { %3271 = vmatpush1.bf16.msra.mxu1 %v4654_v38  ;;  %3231 = vmatprep.subr.bf16.mxu0 %v4659_v39  ;;  %v4720_v38 = vld [vmem:[%s5664_s11 + $0x90] sm:$0xff]   ;;  %v4721_v39 = vld [vmem:[%s5664_s11 + $0xd8] sm:$0xff]  }
 0x3bf   : > { %3272 = vmatprep.subr.bf16.mxu1 %v4662_v20  ;;  %v4722_v20 = vld [vmem:[%s5664_s11 + $0x98] sm:$0xff]  }
 0x3c1   : > { %3232 = vmatpush1.bf16.msra.mxu0 %v4657_v40  ;;  %v4723_v40 = vld [vmem:[%s5664_s11 + $0xe0] sm:$0xff]  }
 0x3c2   : > { %3273 = vmatpush1.bf16.msra.mxu1 %v4660_v49  ;;  %3233 = vmatprep.subr.bf16.mxu0 %v4665_v51  ;;  %v4724_v49 = vld [vmem:[%s5664_s11 + $0xa0] sm:$0xff]  }
 0x3c3   : > { %3274 = vmatprep.subr.bf16.mxu1 %v4668_v37 }
 0x3c5   : > { %3234 = vmatpush1.bf16.msra.mxu0 %v4663_v59 }
 0x3c6   : > { %3275 = vmatpush1.bf16.msra.mxu1 %v4666_v41  ;;  %3235 = vmatprep.subr.bf16.mxu0 %v4671_v63 }
 0x3c7   : > { %3276 = vmatprep.subr.bf16.mxu1 %v4674_v53  ;;  %v4725_v53 = vld [vmem:[%s5664_s11 + $0xe8] sm:$0xff]  }
 0x3c9   : > { %3236 = vmatpush1.bf16.msra.mxu0 %v4669_v54 }
 0x3ca   : > { %3277 = vmatpush1.bf16.msra.mxu1 %v4672_v22  ;;  %3237 = vmatprep.subr.bf16.mxu0 %v4677_v62 }
 0x3cb   : > { %3278 = vmatprep.subr.bf16.mxu1 %v4680_v52  ;;  %v4726_v52 = vld [vmem:[%s5664_s11 + $0xa8] sm:$0xff]  }
 0x3cd   : > { %3238 = vmatpush1.bf16.msra.mxu0 %v4675_v46 }
 0x3ce   : > { %3279 = vmatpush1.bf16.msra.mxu1 %v4678_v23  ;;  %3239 = vmatprep.subr.bf16.mxu0 %v4683_v56  ;;  %v4727_v56 = vld [vmem:[%s5664_s11 + $0xf0] sm:$0xff]  }
 0x3cf   : > { %3280 = vmatprep.subr.bf16.mxu1 %v4686_v18  ;;  %v4728_v18 = vld [vmem:[%s5664_s11 + $0xb0] sm:$0xff]  }
 0x3d1   : > { %3240 = vmatpush1.bf16.msra.mxu0 %v4681_v50  ;;  %v4729_v50 = vld [vmem:[%s5664_s11 + $0xf8] sm:$0xff]  }
 0x3d2   : > { %3281 = vmatpush1.bf16.msra.mxu1 %v4684_v57  ;;  %3241 = vmatprep.subr.bf16.mxu0 %v4689_v58  ;;  %v4730_v57 = vld [vmem:[%s5664_s11 + $0xb8] sm:$0xff]   ;;  %v3295_v58 = vld [vmem:[%s5663_s10] sm:$0xf] }
 0x3d3   : > { %3282 = vmatprep.subr.bf16.mxu1 %v4692_v8 }
 0x3d5   : > { %3242 = vmatpush1.bf16.msra.mxu0 %v4687_v4 }
 0x3d6   : > { %3283 = vmatpush1.bf16.msra.mxu1 %v4690_v36  ;;  %3243 = vmatprep.subr.bf16.mxu0 %v4695_v19  ;;  %v3300_v19 = vrot.slane %v3295_v58, %v5163_v25 }
 0x3d7   : > { %3284 = vmatprep.subr.bf16.mxu1 %v4698_v42 }
 0x3d9   : > { %3244 = vmatpush1.bf16.msra.mxu0 %v4693_v13 }
 0x3da   : > { %3285 = vmatpush1.bf16.msra.mxu1 %v4696_v1  ;;  %4119 = vmatprep.subr.bf16.mxu0 %v4699_v0  ;;  %v3304_v0 = vrot.slane %v3295_v58, %v5165_v29 }
 0x3db   : > { %4141 = vmatprep.subr.bf16.mxu1 %v4715_v48 }
 0x3dc   : > { %3246 = vmatmul.mubr.bf16.vlgmr.msra.gmra.mrb[20].mxu0 %v5477_v9  ;;  %v4705_v9 = vld [vmem:[%s5664_s11 + $0x58] sm:$0xff]  }
 0x3dd   : > { %3287 = vmatmul.mubr.bf16.vlgmr.msra.gmra.mrb[20].mxu1 %v5481_v11  ;;  %4120 = vmatpush3.bf16.msra.mxu0 %v4700_v14  ;;  %v4706_v11 = vld [vmem:[%s5664_s11 + $0x18] sm:$0xff]  }
 0x3de   : > { %4121 = vmatprep.subr.bf16.mxu0 %v4701_v15  ;;  %4142 = vmatpush3.bf16.msra.mxu1 %v4716_v2 }
 0x3df   : > { %4143 = vmatprep.subr.bf16.mxu1 %v4717_v35 }
 0x3e1   : > { %4122 = vmatpush3.bf16.msra.mxu0 %v4702_v17 }
 0x3e2   : > { %4123 = vmatprep.subr.bf16.mxu0 %v4703_v45  ;;  %4144 = vmatpush3.bf16.msra.mxu1 %v4718_v6 }
 0x3e3   : > { %4145 = vmatprep.subr.bf16.mxu1 %v4719_v7 }
 0x3e5   : > { %4124 = vmatpush3.bf16.msra.mxu0 %v4704_v43 }
 0x3e6   : > { %4125 = vmatprep.subr.bf16.mxu0 %v4705_v9  ;;  %4146 = vmatpush3.bf16.msra.mxu1 %v4720_v38 }
 0x3e7   : > { %4147 = vmatprep.subr.bf16.mxu1 %v4721_v39 }
 0x3e9   : > { %4126 = vmatpush3.bf16.msra.mxu0 %v4706_v11 }
 0x3ea   : > { %4127 = vmatprep.subr.bf16.mxu0 %v4707_v3  ;;  %4148 = vmatpush3.bf16.msra.mxu1 %v4722_v20 }
 0x3eb   : > { %4149 = vmatprep.subr.bf16.mxu1 %v4723_v40  ;;  %v3393_v40 = vld [vmem:[%s5665_s12] sm:$0x1] }
 0x3ed   : > { %4128 = vmatpush3.bf16.msra.mxu0 %v4708_v21 }
 0x3ee   : > { %4129 = vmatprep.subr.bf16.mxu0 %v4709_v16  ;;  %4150 = vmatpush3.bf16.msra.mxu1 %v4724_v49  ;;  %v3308_v16 = vrot.slane %v3295_v58, %v5167_v32 }
 0x3ef   : > { %v2361_v24 = vpop.f32.mrb[8].mxu0  ;;  %v2402_v55 = vpop.f32.mrb[8].mxu1  ;;  %4151 = vmatprep.subr.bf16.mxu1 %v4725_v53 }
 0x3f0   : > { %v5519_v44 = vadd.f32 %v2402_v55, %v2361_v24  ;;  %v2363_v5 = vpop.f32.mrb[9].mxu0  ;;  %v2404_v12 = vpop.f32.mrb[9].mxu1 }
 0x3f1   : > { %v5524_v26 = vadd.f32 %v2404_v12, %v2363_v5  ;;  %v2365_v28 = vpop.f32.mrb[10].mxu0  ;;  %v2406_v60 = vpop.f32.mrb[10].mxu1  ;;  %4130 = vmatpush3.bf16.msra.mxu0 %v4710_v30 }
 0x3f2   : > { %v2366_v61 = vpop.f32.mrb[11].mxu0  ;;  %v2407_v31 = vpop.f32.mrb[11].mxu1  ;;  %4131 = vmatprep.subr.bf16.mxu0 %v4711_v27  ;;  %4152 = vmatpush3.bf16.msra.mxu1 %v4726_v52  ;;  %v3312_v60 = vrot.slane %v3295_v58, %v5216_v10 }
 0x3f3   : > { %4153 = vmatprep.subr.bf16.mxu1 %v4727_v56 }
 0x3f5   : > { %4132 = vmatpush3.bf16.msra.mxu0 %v4712_v47 }
 0x3f6   : > { %4133 = vmatprep.subr.bf16.mxu0 %v4713_v33  ;;  %4154 = vmatpush3.bf16.msra.mxu1 %v4728_v18 }
 0x3f7   : > { %4155 = vmatprep.subr.bf16.mxu1 %v4729_v50 }
 0x3f9   : > { %4134 = vmatpush3.bf16.msra.mxu0 %v4714_v34 }
 0x3fa   : > { %4156 = vmatpush3.bf16.msra.mxu1 %v4730_v57 }
 0x42f   : > { %v2443_v51 = vpop.f32.mrb[12].mxu0  ;;  %v2484_v37 = vpop.f32.mrb[12].mxu1 }
 0x430   : > { %v2485_v59 = vadd.f32 %v2484_v37, %v2443_v51  ;;  %v2445_v41 = vpop.f32.mrb[13].mxu0  ;;  %v2486_v63 = vpop.f32.mrb[13].mxu1 }
 0x431   : > { %v2487_v54 = vadd.f32 %v2486_v63, %v2445_v41  ;;  %v2447_v22 = vpop.f32.mrb[14].mxu0  ;;  %v2488_v62 = vpop.f32.mrb[14].mxu1 }
 0x432   : > { %v2448_v46 = vpop.f32.mrb[15].mxu0  ;;  %v2489_v23 = vpop.f32.mrb[15].mxu1 }
 0x46f   : > { %v3165_v8 = vpop.f32.mrb[16].mxu0 }
 0x470   : > { %v3166_v4 = vadd.f32 %v3165_v8, %v5519_v44  ;;  %v3206_v36 = vpop.f32.mrb[16].mxu1  ;;  %v3167_v42 = vpop.f32.mrb[17].mxu0 }
 0x471   : > { %v3168_v13 = vadd.f32 %v3167_v42, %v5524_v26  ;;  %v3208_v1 = vpop.f32.mrb[17].mxu1  ;;  %v3169_v14 = vpop.f32.mrb[18].mxu0 }
 0x472   : > { %v3207_v15 = vadd.f32 %v3206_v36, %v3166_v4  ;;  %v3210_v17 = vpop.f32.mrb[18].mxu1  ;;  %v3170_v45 = vpop.f32.mrb[19].mxu0 }
 0x473   : > { %v3209_v43 = vadd.f32 %v3208_v1, %v3168_v13  ;;  %v3211_v9 = vpop.f32.mrb[19].mxu1 }
 0x474   : > { %v3317_v11 = vadd.f32 %v3300_v19, %v3207_v15 }
 0x475   : > { %v3318_v3 = vadd.f32 %v3304_v0, %v3209_v43 }
 0x476   : > { %v3321_v21 = vmax.f32 %v3317_v11, 0.0 }
 0x477   : > { %v3322_v24 = vmax.f32 %v3318_v3, 0.0 }
 0x478   : > { %v3325_v44 = vpack.c.bf16 %v3321_v21, %v3321_v21 }
 0x479   : > { %v3326_v55 = vpack.c.bf16 %v3322_v24, %v3322_v24 }
 0x47b   : > { %3618 = vmatprep.mubr.bf16.mxu0 %v3326_v55 }
 0x47c   : > { %3619 = vmatmul.mubr.bf16.vlgmr.msra.gmra.mrb[24].mxu0 %v3325_v44 }
 0x4af   : > { %v3247_v25 = vpop.f32.mrb[20].mxu0 }
 0x4b0   : > { %v3248_v5 = vadd.f32 %v3247_v25, %v2485_v59  ;;  %v3288_v12 = vpop.f32.mrb[20].mxu1  ;;  %v3249_v29 = vpop.f32.mrb[21].mxu0 }
 0x4b1   : > { %v3250_v26 = vadd.f32 %v3249_v29, %v2487_v54  ;;  %v3290_v28 = vpop.f32.mrb[21].mxu1  ;;  %v3251_v30 = vpop.f32.mrb[22].mxu0 }
 0x4b2   : > { %v3289_v61 = vadd.f32 %v3288_v12, %v3248_v5  ;;  %v3292_v31 = vpop.f32.mrb[22].mxu1  ;;  %v3252_v27 = vpop.f32.mrb[23].mxu0 }
 0x4b3   : > { %v3291_v47 = vadd.f32 %v3290_v28, %v3250_v26  ;;  %v3293_v33 = vpop.f32.mrb[23].mxu1 }
 0x4b4   : > { %v3319_v34 = vadd.f32 %v3308_v16, %v3289_v61 }
 0x4b5   : > { %v3320_v48 = vadd.f32 %v3312_v60, %v3291_v47 }
 0x4b6   : > { %v3323_v2 = vmax.f32 %v3319_v34, 0.0 }
 0x4b7   : > { %v3324_v35 = vmax.f32 %v3320_v48, 0.0 }
 0x4b8   : > { %v3327_v7 = vpack.c.bf16 %v3323_v2, %v3323_v2 }
 0x4b9   : > { %v3328_v6 = vpack.c.bf16 %v3324_v35, %v3324_v35 }
 0x4bb   : > { %3658 = vmatprep.mubr.bf16.mxu1 %v3328_v6 }
 0x4bc   : > { %3659 = vmatmul.mubr.bf16.vlgmr.msra.gmra.mrb[24].mxu1 %v3327_v7 }
 0x54f   : > { %v4135_v32 = vpop.f32.mrb[24].mxu0 }
 0x550   : > { %v4136_v38 = vpop.f32.mrb[25].mxu0 }
 0x551   : > { %v4137_v39 = vadd.f32 %v4136_v38, %v4135_v32  ;;  %v4138_v10 = vpop.f32.mrb[26].mxu0 }
 0x552   : > { %v4139_v20 = vpop.f32.mrb[27].mxu0 }
 0x553   : > { %v3621_v37 = vadd.f32 %v4137_v39, %v3393_v40 }
 0x58f   : > { %v4157_v49 = vpop.f32.mrb[24].mxu1 }
 0x590   : > { %v4158_v51 = vpop.f32.mrb[25].mxu1 }
 0x591   : > { %v4159_v59 = vadd.f32 %v4158_v51, %v4157_v49  ;;  %v4160_v41 = vpop.f32.mrb[26].mxu1 }
 0x592   : > { %v4161_v63 = vpop.f32.mrb[27].mxu1 }
 0x593   : > { %v3661_v53 = vadd.f32 %v4159_v59, %v3621_v37 }
 0x595   : > { %3666 = vst [vmem:[%s496_s27] sm:$0x1] %v3661_v53 }
 0x596   : > { %4800 = shalt.err (!%p4797_p6)
}
 0x597   : > { %s4801_s13 = scalar_lea.hbm %s5606_s14, 16  ;;  %s4805_s22 = scalar_lea.hbm %s5698_s21, 32 }
 0x598   : > { %p4802_p7 = scmp.ne.s32.totalorder %s5606_s14, %s4801_s13  ;;  %p4806_p0 = scmp.lt.u32.totalorder %s5606_s14, %s5698_s21 }
 0x599   : > { %p4807_p4 = scmp.lt.u32.totalorder %s4805_s22, %s4801_s13  ;;  %p4809_p1 = scmp.lt.u32.totalorder %s4801_s13, %s5606_s14 }
 0x59a   : > { %p4803_p9 = pnand %p4802_p7, %p5699_p8 }
 0x59b   : > { %p4808_p13 = por %p4807_p4, %p4806_p0 }
 0x59c   : > { %p4804_p12 = pneg %p4803_p9 }
 0x59d   : > { %p4810_p10 = por %p4809_p1, %p4808_p13 }
 0x59f   : > { %p4811_p11 = pnand %p4810_p10, %p4804_p12 }
 0x5a1   : > { %4814 = shalt.err (!%p4811_p11)
}
 0x5a2   : > { %4171 = dma.vmem_to_hbm [thread:$0]  (%p5699_p8), %s5608_s29, 16, %s5606_s14, %s3668_s24  }
 0x5a3 PF: > { %s5700_s25 = sld [smem:[#allocation15_spill]]  ;;  %s5701_s20 = sld [smem:[#allocation12_spill]] }
 0x5a4   : > { %s5702_s28 = sld [smem:[#allocation18_spill]] }
 0x5a9   : > { %p4188_p2 = scmp.ge.s32.totalorder %s5700_s25, 2  ;;  %s3692_s17 = sand.u32 1, %s5701_s20  }
 0x5aa   : > { %p5703_p3 = scmp.ne.s32.totalorder %s5702_s28, 0  ;;  %s3693_s15 = scalar_lea.sflag [#allocation5], %s3692_s17 }
 0x5ac   : > { %p4181_p5 = pnand %p4188_p2, %p5703_p3 }
 0x5ae   : > { %4848 = dma.done.wait (!%p4181_p5), %s3693_s15, 16  }
 0x5af   : > { %4850 = vsyncadd (!%p4181_p5), %s3693_s15, 4294967280  ;;  %s28_s30 = sadd.s32 1, %s5700_s25   ;;  %s5704_s16 = sld [smem:[#allocation13_spill]] }
 0x5b0   : > { %p25_p6 = scmp.ge.s32.totalorder %s28_s30, 4   ;;  %s5705_s27 = sld [smem:[#allocation19_spill]] }
 0x5b1   : > { %s5706_s28 = sld [smem:[#allocation14_spill]]  ;;  %s5707_s29 = sld [smem:[#allocation16_spill]] }
 0x5b2   : > { %s5708_s25 = smov %s4857_s26  ;;  %27 = sbr.rel (!%p25_p6) target bundleno = 8 (0x8), region = 127 }
 0x5b5   : > { %s5709_s26 = smov %s5704_s16 }
 0x5b9   :  { %3697 = vsyncpa [#allocation4], 1 }
 0x5ba   :  { %3699 = vsyncpa [#allocation4 + $0x1], 1 }
 0x5bb   :  { %3700 = vsyncpa [#allocation7], 1 }
 0x5bc   :  { %3701 = vsyncpa [#allocation5], 1 }
 0x5bd   :  { %3703 = vsyncpa [#allocation5 + $0x1], 1 }

</bundles_post_ra>
